<compile_context>
chip_gen: v6e
topology: v6e:2x2x1
jax: 0.10.0
libtpu: 0.0.40
codegen_flags: <defaults>
</compile_context>

<pallas_src>
import functools

import jax
import jax.numpy as jnp
from jax.experimental import pallas as pl
from jax.experimental.pallas import tpu as pltpu


_TAN_PI_8 = 0.4142135623730951
_PI = 3.141592653589793
_PI_2 = 1.5707963267948966
_PI_4 = 0.7853981633974483


def _atan2(y, x):
    """Hand-rolled float32 atan2(y, x).

    The only divide is an EUP reciprocal (approx + 2 Newton steps); the core
    approximation is the Cephes atanf odd polynomial after a tan(pi/8) range
    reduction, followed by standard quadrant fix-ups.  Max abs error vs
    jnp.arctan2 is ~1e-6 rad.
    """
    ax = jnp.abs(x)
    ay = jnp.abs(y)
    mx = jnp.maximum(ax, ay)
    mn = jnp.minimum(ax, ay)

    # Pick the reduced argument BEFORE dividing, so only one reciprocal is
    # needed:  q = mn/mx <= 1;  if q > tan(pi/8):
    #   atan(q) = pi/4 + atan((mn - mx) / (mn + mx)).
    big = mn > _TAN_PI_8 * mx
    num = jnp.where(big, mn - mx, mn)
    den = jnp.where(big, mn + mx, mx)
    den = jnp.where(den == 0.0, 1.0, den)          # atan2(0, 0) -> 0

    r = pl.reciprocal(den, approx=True)            # EUP slot (free here)
    r = r * (2.0 - den * r)                        # Newton step 1
    r = r * (2.0 - den * r)                        # Newton step 2
    w = num * r                                    # |w| <= tan(pi/8)

    z = w * w
    p = ((((8.05374449538e-2 * z - 1.38776856032e-1) * z
           + 1.99777106478e-1) * z - 3.33329491539e-1) * z) * w + w
    a = jnp.where(big, _PI_4 + p, p)               # atan(mn / mx)
    a = jnp.where(ay > ax, _PI_2 - a, a)           # atan(ay / ax) in [0, pi/2]
    a = jnp.where(x < 0.0, _PI - a, a)             # quadrants II / III
    return jnp.where(y < 0.0, -a, a)               # lower half-plane


def _mag_phase_kernel(x_ref, o_ref, *, eps):
    # x_ref block: (S, tile_c), lane-interleaved [re, im, re, im, ...].
    x = x_ref[...].astype(jnp.float32)
    n_lane = x.shape[-1]

    # Neighbour exchange along the lane axis (XLU): value of lane j+1 / j-1
    # at lane j.  shift = n_lane - 1 is the non-negative form of shift -1.
    nxt = pltpu.roll(x, shift=n_lane - 1, axis=1)  # == jnp.roll(x, -1, axis=1)
    prv = pltpu.roll(x, shift=1, axis=1)           # == jnp.roll(x, +1, axis=1)

    lane = jax.lax.broadcasted_iota(jnp.int32, x.shape, 1)
    is_re = (lane & 1) == 0                        # even lanes hold the real part

    re = jnp.where(is_re, x, prv)                  # real of the pair, every lane
    im = jnp.where(is_re, nxt, x)                  # imag of the pair, every lane

    mag = jnp.sqrt(re * re + im * im + eps)
    ph = _atan2(im, re + eps)

    # Magnitude on even lanes, phase on odd lanes -> output stays in the
    # module's interleaved [..., (mag, phase)] layout; fully lane-dense store.
    o_ref[...] = jnp.where(is_re, mag, ph).astype(o_ref.dtype)


def magnitude_phase_converter(x: jax.Array, eps: float = 1e-8) -> jax.Array:
    """(..., 2) interleaved [real, imag] -> (..., 2) interleaved [mag, phase]."""
    assert x.shape[-1] == 2, "last dim must hold (real, imag)"
    orig_shape = x.shape
    n2 = x.size                                    # total scalars (always even)

    # Planar (S, L) view of the raw buffer: S | n2 and L = n2 // S even, so
    # every row starts on a complex-pair boundary.  S == 8 gives full sublane
    # packing (true for the module's (batch, 20, 19, 19, 2) shapes with even
    # batch); smaller powers of two are only a fallback.
    S = 8
    while S > 1 and n2 % (2 * S) != 0:
        S //= 2
    L = n2 // S

    # Lane tile: multiple of 128, ~2 MiB per block buffer, but at least two
    # grid steps whenever possible (lets v7x megacore use both TensorCores).
    MAX_TILE_C = 64 * 1024
    tile_c = int(min(MAX_TILE_C, pl.cdiv(pl.cdiv(L, 2), 128) * 128))
    tile_c = max(tile_c, 128)
    grid = (int(pl.cdiv(L, tile_c)),)

    x2 = x.reshape(S, L)                           # pure reshape: no transpose/pad

    spec = pl.BlockSpec((S, tile_c), lambda k: (0, k))
    out2 = pl.pallas_call(
        functools.partial(_mag_phase_kernel, eps=float(eps)),
        out_shape=jax.ShapeDtypeStruct((S, L), x.dtype),
        grid=grid,
        in_specs=[spec],
        out_specs=spec,
        compiler_params=pltpu.CompilerParams(
            dimension_semantics=("parallel",),
            vmem_limit_bytes=32 * 1024 * 1024,
        ),
        cost_estimate=pl.CostEstimate(
            flops=60 * n2,
            transcendentals=2 * n2,
            bytes_accessed=2 * n2 * x.dtype.itemsize,
        ),
    )(x2)

    return out2.reshape(orig_shape)


def _reference(x: jax.Array, eps: float = 1e-8) -> jax.Array:
    real = x[..., 0]
    imag = x[..., 1]
    magnitude = jnp.sqrt(real ** 2 + imag ** 2 + eps)
    phase = jnp.arctan2(imag, real + eps)
    return jnp.stack([magnitude, phase], axis=-1)


if __name__ == "__main__":
    key = jax.random.PRNGKey(0)
    # Shape implied by the module forward: (batch, 20, 19, 19, 2).
    x = jax.random.normal(key, (2, 20, 19, 19, 2), dtype=jnp.float32)

    fn = jax.jit(magnitude_phase_converter)
    out = jax.block_until_ready(fn(x))

    ref = _reference(x)
    assert out.shape == x.shape
    err = float(jnp.max(jnp.abs(out - ref)))
    assert jnp.allclose(out, ref, atol=1e-5, rtol=1e-5), f"max abs err {err}"
    print("KERNEL_OK")
</pallas_src>

<mosaic_0001>
module attributes {stable_mosaic.version = 11 : i64} {
  func.func @_mag_phase_kernel(%arg0: i32, %arg1: memref<8x1920xf32, #tpu.memory_space<vmem>>, %arg2: memref<8x1920xf32, #tpu.memory_space<vmem>>) attributes {dimension_semantics = [#tpu.dimension_semantics<parallel>], iteration_bounds = array<i64: 2>, scalar_prefetch = 0 : i64, scratch_operands = 0 : i64, tpu.core_type = #tpu.core_type<tc>, window_params = [{transform_indices = @transform_0, window_bounds = array<i64: 8, 1920>}, {transform_indices = @transform_1, window_bounds = array<i64: 8, 1920>}]} {
    %c0 = arith.constant 0 : index
    %c0_0 = arith.constant 0 : index
    %0 = vector.load %arg1[%c0, %c0_0] : memref<8x1920xf32, #tpu.memory_space<vmem>>, vector<8x1920xf32>
    %c1919_i32 = arith.constant 1919 : i32
    %1 = tpu.dynamic_rotate %0 by %c1919_i32 dim 1 : vector<8x1920xf32>, i32 -> vector<8x1920xf32>
    %c1_i32 = arith.constant 1 : i32
    %2 = tpu.dynamic_rotate %0 by %c1_i32 dim 1 : vector<8x1920xf32>, i32 -> vector<8x1920xf32>
    %3 = tpu.iota {dimensions = array<i32: 1>} : vector<8x1920xi32>
    %c1_i32_1 = arith.constant 1 : i32
    %4 = vector.broadcast %c1_i32_1 : i32 to vector<8x1920xi32>
    %5 = arith.andi %3, %4 : vector<8x1920xi32>
    %c0_i32 = arith.constant 0 : i32
    %6 = vector.broadcast %c0_i32 : i32 to vector<8x1920xi32>
    %7 = arith.cmpi eq, %5, %6 : vector<8x1920xi32>
    %8 = arith.select %7, %0, %2 : vector<8x1920xi1>, vector<8x1920xf32>
    %9 = arith.select %7, %1, %0 : vector<8x1920xi1>, vector<8x1920xf32>
    %10 = arith.mulf %8, %8 : vector<8x1920xf32>
    %11 = arith.mulf %9, %9 : vector<8x1920xf32>
    %12 = arith.addf %10, %11 : vector<8x1920xf32>
    %cst = arith.constant 9.99999993E-9 : f32
    %13 = vector.broadcast %cst : f32 to vector<8x1920xf32>
    %14 = arith.addf %12, %13 : vector<8x1920xf32>
    %15 = math.sqrt %14 : vector<8x1920xf32>
    %cst_2 = arith.constant 9.99999993E-9 : f32
    %16 = vector.broadcast %cst_2 : f32 to vector<8x1920xf32>
    %17 = arith.addf %8, %16 : vector<8x1920xf32>
    %18 = math.absf %17 : vector<8x1920xf32>
    %19 = math.absf %9 : vector<8x1920xf32>
    %20 = arith.maximumf %18, %19 : vector<8x1920xf32>
    %21 = arith.minimumf %18, %19 : vector<8x1920xf32>
    %cst_3 = arith.constant 0.414213568 : f32
    %22 = vector.broadcast %cst_3 : f32 to vector<8x1920xf32>
    %23 = arith.mulf %22, %20 : vector<8x1920xf32>
    %24 = arith.cmpf ogt, %21, %23 : vector<8x1920xf32>
    %25 = arith.subf %21, %20 : vector<8x1920xf32>
    %26 = arith.select %24, %25, %21 : vector<8x1920xi1>, vector<8x1920xf32>
    %27 = arith.addf %21, %20 : vector<8x1920xf32>
    %28 = arith.select %24, %27, %20 : vector<8x1920xi1>, vector<8x1920xf32>
    %cst_4 = arith.constant 0.000000e+00 : f32
    %29 = vector.broadcast %cst_4 : f32 to vector<8x1920xf32>
    %30 = arith.cmpf oeq, %28, %29 : vector<8x1920xf32>
    %cst_5 = arith.constant 1.000000e+00 : f32
    %31 = vector.broadcast %cst_5 : f32 to vector<8x1920xf32>
    %32 = arith.select %30, %31, %28 : vector<8x1920xi1>, vector<8x1920xf32>
    %33 = tpu.reciprocal %32 {approx = true} : vector<8x1920xf32> -> vector<8x1920xf32>
    %34 = arith.mulf %32, %33 : vector<8x1920xf32>
    %cst_6 = arith.constant 2.000000e+00 : f32
    %35 = vector.broadcast %cst_6 : f32 to vector<8x1920xf32>
    %36 = arith.subf %35, %34 : vector<8x1920xf32>
    %37 = arith.mulf %33, %36 : vector<8x1920xf32>
    %38 = arith.mulf %32, %37 : vector<8x1920xf32>
    %cst_7 = arith.constant 2.000000e+00 : f32
    %39 = vector.broadcast %cst_7 : f32 to vector<8x1920xf32>
    %40 = arith.subf %39, %38 : vector<8x1920xf32>
    %41 = arith.mulf %37, %40 : vector<8x1920xf32>
    %42 = arith.mulf %26, %41 : vector<8x1920xf32>
    %43 = arith.mulf %42, %42 : vector<8x1920xf32>
    %cst_8 = arith.constant 0.0805374458 : f32
    %44 = vector.broadcast %cst_8 : f32 to vector<8x1920xf32>
    %45 = arith.mulf %44, %43 : vector<8x1920xf32>
    %cst_9 = arith.constant 0.138776854 : f32
    %46 = vector.broadcast %cst_9 : f32 to vector<8x1920xf32>
    %47 = arith.subf %45, %46 : vector<8x1920xf32>
    %48 = arith.mulf %47, %43 : vector<8x1920xf32>
    %cst_10 = arith.constant 0.199777111 : f32
    %49 = vector.broadcast %cst_10 : f32 to vector<8x1920xf32>
    %50 = arith.addf %48, %49 : vector<8x1920xf32>
    %51 = arith.mulf %50, %43 : vector<8x1920xf32>
    %cst_11 = arith.constant 0.333329499 : f32
    %52 = vector.broadcast %cst_11 : f32 to vector<8x1920xf32>
    %53 = arith.subf %51, %52 : vector<8x1920xf32>
    %54 = arith.mulf %53, %43 : vector<8x1920xf32>
    %55 = arith.mulf %54, %42 : vector<8x1920xf32>
    %56 = arith.addf %55, %42 : vector<8x1920xf32>
    %cst_12 = arith.constant 0.785398185 : f32
    %57 = vector.broadcast %cst_12 : f32 to vector<8x1920xf32>
    %58 = arith.addf %57, %56 : vector<8x1920xf32>
    %59 = arith.select %24, %58, %56 : vector<8x1920xi1>, vector<8x1920xf32>
    %60 = arith.cmpf ogt, %19, %18 : vector<8x1920xf32>
    %cst_13 = arith.constant 1.57079637 : f32
    %61 = vector.broadcast %cst_13 : f32 to vector<8x1920xf32>
    %62 = arith.subf %61, %59 : vector<8x1920xf32>
    %63 = arith.select %60, %62, %59 : vector<8x1920xi1>, vector<8x1920xf32>
    %cst_14 = arith.constant 0.000000e+00 : f32
    %64 = vector.broadcast %cst_14 : f32 to vector<8x1920xf32>
    %65 = arith.cmpf olt, %17, %64 : vector<8x1920xf32>
    %cst_15 = arith.constant 3.14159274 : f32
    %66 = vector.broadcast %cst_15 : f32 to vector<8x1920xf32>
    %67 = arith.subf %66, %63 : vector<8x1920xf32>
    %68 = arith.select %65, %67, %63 : vector<8x1920xi1>, vector<8x1920xf32>
    %cst_16 = arith.constant 0.000000e+00 : f32
    %69 = vector.broadcast %cst_16 : f32 to vector<8x1920xf32>
    %70 = arith.cmpf olt, %9, %69 : vector<8x1920xf32>
    %cst_17 = arith.constant 0.000000e+00 : f32
    %71 = vector.broadcast %cst_17 : f32 to vector<8x1920xf32>
    %72 = arith.subf %71, %68 : vector<8x1920xf32>
    %73 = arith.select %70, %72, %68 : vector<8x1920xi1>, vector<8x1920xf32>
    %74 = arith.select %7, %15, %73 : vector<8x1920xi1>, vector<8x1920xf32>
    %c0_18 = arith.constant 0 : index
    %c0_19 = arith.constant 0 : index
    %75 = vector.load %arg2[%c0_18, %c0_19] : memref<8x1920xf32, #tpu.memory_space<vmem>>, vector<8x1920xf32>
    tpu.vector_store %arg2[%c0_18, %c0_19], %74 {strides = array<i32>} : memref<8x1920xf32, #tpu.memory_space<vmem>>, vector<8x1920xf32>,
    return
  }
  func.func @transform_0(%arg0: i32) -> (i32, i32) {
    %c0_i32 = arith.constant 0 : i32
    %c0_i32_0 = arith.constant 0 : i32
    return %c0_i32, %arg0 : i32, i32
  }
  func.func @transform_1(%arg0: i32) -> (i32, i32) {
    %c0_i32 = arith.constant 0 : i32
    %c0_i32_0 = arith.constant 0 : i32
    return %c0_i32, %arg0 : i32, i32
  }
}

</mosaic_0001>

<bundles_post_ra>
// kernel: magnitude_phase_converter.1
= control target key start
LH: loop header
LB: loop body
LE: loop exit
PB: predicated region body
PF: predicated region fallthrough
CT: control target
= control target key end

     0   :  { %s2154_s6 = smov 0   ;;  %s2156_s7 = smov 0   ;;  %s4235_s0 = inlined_call_operand.vmem [shape: f32[8,3610], index: 0, kind: input, shape index: {}]   ;;  %s4236_s1 = inlined_call_operand.vmem [shape: f32[8,3610], index: 1, kind: output, shape index: {}]  }
   0x1   :  { %s2158_s8 = smov 0  }
   0x2 LB: > { %s2167_s9 = sadd.s32 4294967295, %s2074_s8   ;;  %s2169_s10 = sadd.s32 1, %s2074_s8   ;;  %s2074_s8 = sphi %s2158_s8, %s4624_s8   ;;  %s2070_s7 = sphi %s2156_s7, %s4623_s7   ;;  %s2066_s6 = sphi %s2154_s6, %s4622_s6  }
   0x3   : > { %s41_s11 = ssub.s32 %s2074_s8, %s2169_s10  ;;  %s44_s12 = sadd.s32 1, %s2070_s7 }
   0x4   : > { %p42_p0 = scmp.eq.s32.totalorder %s41_s11, 0  ;;  %p54_p1 = scmp.ne.s32.totalorder %s2070_s7, %s2066_s6 }
   0x5   : > { %p55_p2 = scmp.eq.s32.totalorder %s2167_s9, 1  ;;  %p1700_p3 = scmp.ge.s32.totalorder %s2074_s8, 1 }
   0x6   : > { %s2177_s13 = scalar_select %p42_p0, %s2070_s7, %s44_s12  }
   0x7   : > { %p2179_p4 = por %p55_p2, %p54_p1  ;;  %p96_p5 = scmp.lt.s32.totalorder %s2074_s8, 3 }
   0x9   : > { %p97_p6 = pnand %p1700_p3, %p96_p5 }
   0xb   : > { %100 = sbr.rel (%p97_p6) target bundleno = 572 (0x23c), region = 24 }
  0x10   : > { %s2184_s15 = smul.u32 15, %s2167_s9  ;;  %s2140_s21 = smov 1   ;;  %v183_v19 = vlaneseq  ;;  %v4369_v40 = vmov 0  ;;  %v4373_v50 = vmov 0 }
  0x11   : > { %s2141_s22 = smov 127   ;;  %s116_s23 = sand.u32 1, %s2066_s6  }
  0x12   : > { %p124_p7 = scmp.lt.s32.totalorder %s2184_s15, 28  ;;  %v2289_v22 = vand.u32 127, %v183_v19  ;;  %s3004_s24 = smul.u32 120, %s116_s23 }
  0x13   : > { %s1154_s26 = ssub.s32 (%p2179_p4), 29, %s2184_s15  ;;  %s1761_s27 = smul.u32 (%p2179_p4), 120, %s2167_s9 }
  0x14   : > { %s125_s16 = scalar_select %p124_p7, %s2184_s15, 28  ;;  %vm231_vm0 = vcmp.lt.s32.totalorder %v2289_v22, 1  ;;  %v247_v29 = vadd.s32 128, %v2289_v22  ;;  %v261_v39 = vand.u32 1, %v2289_v22  ;;  %v249_v44 = vadd.s32 384, %v2289_v22 }
  0x15   : > { %v248_v45 = vadd.s32 256, %v2289_v22  ;;  %v250_v46 = vadd.s32 512, %v2289_v22  ;;  %v251_v48 = vadd.s32 640, %v2289_v22  ;;  %v252_v52 = vadd.s32 768, %v2289_v22  ;;  %s3066_s25 = scalar_lea.vmem [#allocation2], %s3004_s24   ;;  %p1155_p8 = scmp.lt.s32.totalorder (%p2179_p4), %s1154_s26, 15 }
  0x16   : > { %s1701_s17 = sshll.u32 %s125_s16, 3  ;;  %v262_v34 = vand.u32 1, %v247_v29  ;;  %vm2344_vm2 = vcmp.eq.s32.totalorder %v261_v39, 0  ;;  %v253_v53 = vadd.s32 896, %v2289_v22  ;;  %v264_v56 = vand.u32 1, %v249_v44  ;;  %s3820_s30 = scalar_lea.vmem (%p2179_p4), %s4236_s1, %s1761_s27  }
  0x17   : > { %s2191_s20 = scalar_lea.vmem %s4235_s0, %s1701_s17  ;;  %v4374_v50 = vsel %vm2344_vm2, 4294967295, %v4373_v50  ;;  %v263_v57 = vand.u32 1, %v248_v45  ;;  %vm4287_vm3 = vcmp.lt.s32.totalorder %v2289_v22, 127  ;;  %v265_v59 = vand.u32 1, %v250_v46 }
  0x18   : > { %v2194_v0 = vld [vmem:[%s2191_s20 + $0x10] sm:$0xff]  ;;  %v2197_v1 = vld [vmem:[%s2191_s20] sm:$0xff]  ;;  %v2204_v2 = vld [vmem:[%s2191_s20 + $0x18] sm:$0xff]  ;;  %vm2319_vm1 = vcmp.eq.s32.totalorder %v262_v34, 0  ;;  %4375 = vst [vmem:[#allocation8_spill] sm:$0xff] %v4374_v50  ;;  %v266_v61 = vand.u32 1, %v251_v48 }
  0x19   : > { %205 = vrot.lane.b32.xlu1 %v2194_v0, %s2140_s21  ;;  %201 = vrot.lane.b32.xlu0 %v2197_v1, %s2140_s21  ;;  %v2207_v3 = vld [vmem:[%s2191_s20 + $0x8] sm:$0xff]  ;;  %v2217_v5 = vld [vmem:[%s2191_s20 + $0x20] sm:$0xff]  ;;  %v4370_v40 = vsel %vm2319_vm1, 4294967295, %v4369_v40  ;;  %vm2373_vm4 = vcmp.eq.s32.totalorder %v264_v56, 0  ;;  %vm2380_vm5 = vcmp.eq.s32.totalorder %v263_v57, 0  ;;  %vm2390_vm6 = vcmp.eq.s32.totalorder %v265_v59, 0 }
  0x1a   : > { %v2214_v4 = vld [vmem:[%s2191_s20 + $0x28] sm:$0xff]  ;;  %v2224_v6 = vld [vmem:[%s2191_s20 + $0x38] sm:$0xff]  ;;  %v2227_v7 = vld [vmem:[%s2191_s20 + $0x30] sm:$0xff]  ;;  %4371 = vst [vmem:[#allocation6_spill] sm:$0xff] %v4370_v40  ;;  %v2418_v46 = vadd.s32 1280, %v2289_v22  ;;  %vm2439_vm7 = vcmp.eq.s32.totalorder %v266_v61, 0 }
  0x1b   : > { %4366 = vst [vmem:[#allocation3_spill] sm:$0xff] %v2224_v6  ;;  %v2234_v8 = vld [vmem:[%s2191_s20 + $0x48] sm:$0xff]  ;;  %v2237_v9 = vld [vmem:[%s2191_s20 + $0x40] sm:$0xff]  ;;  %v2244_v10 = vld [vmem:[%s2191_s20 + $0x58] sm:$0xff]  ;;  %v4393_v57 = vmov 0  ;;  %v4402_v40 = vmov 0 }
  0x1c   : > { %4367 = vst [vmem:[#allocation4_spill] sm:$0xff] %v2234_v8  ;;  %4368 = vst [vmem:[#allocation5_spill] sm:$0xff] %v2237_v9  ;;  %v2247_v11 = vld [vmem:[%s2191_s20 + $0x50] sm:$0xff]  ;;  %v2254_v12 = vld [vmem:[%s2191_s20 + $0x68] sm:$0xff]  ;;  %v4394_v57 = vsel %vm2439_vm7, 4294967295, %v4393_v57 }
  0x1d   : > { %207 = vrot.lane.b32.xlu1 %v2204_v2, %s2140_s21  ;;  %203 = vrot.lane.b32.xlu0 %v2207_v3, %s2140_s21  ;;  %v2257_v13 = vld [vmem:[%s2191_s20 + $0x60] sm:$0xff]  ;;  %v2264_v14 = vld [vmem:[%s2191_s20 + $0x70] sm:$0xff]  ;;  %4395 = vst [vmem:[#allocation20_spill] sm:$0xff] %v4394_v57 }
  0x21   : > { %211 = vrot.lane.b32.xlu1 %v2214_v4, %s2140_s21  ;;  %209 = vrot.lane.b32.xlu0 %v2217_v5, %s2140_s21 }
  0x25   : > { %215 = vrot.lane.b32.xlu1 %v2224_v6, %s2140_s21  ;;  %213 = vrot.lane.b32.xlu0 %v2227_v7, %s2140_s21 }
  0x29   : > { %219 = vrot.lane.b32.xlu1 %v2234_v8, %s2140_s21  ;;  %217 = vrot.lane.b32.xlu0 %v2237_v9, %s2140_s21 }
  0x2d   : > { %223 = vrot.lane.b32.xlu1 %v2244_v10, %s2140_s21  ;;  %221 = vrot.lane.b32.xlu0 %v2247_v11, %s2140_s21 }
  0x31   : > { %227 = vrot.lane.b32.xlu1 %v2254_v12, %s2140_s21  ;;  %225 = vrot.lane.b32.xlu0 %v2257_v13, %s2140_s21 }
  0x35   : > { %153 = vrot.lane.b32.xlu1 %v2197_v1, %s2141_s22  ;;  %229 = vrot.lane.b32.xlu0 %v2264_v14, %s2140_s21 }
  0x39   : > { %157 = vrot.lane.b32.xlu1 %v2194_v0, %s2141_s22  ;;  %155 = vrot.lane.b32.xlu0 %v2207_v3, %s2141_s22 }
  0x3d   : > { %161 = vrot.lane.b32.xlu1 %v2217_v5, %s2141_s22  ;;  %159 = vrot.lane.b32.xlu0 %v2204_v2, %s2141_s22 }
  0x41   : > { %165 = vrot.lane.b32.xlu1 %v2227_v7, %s2141_s22  ;;  %163 = vrot.lane.b32.xlu0 %v2214_v4, %s2141_s22 }
  0x45   : > { %169 = vrot.lane.b32.xlu1 %v2237_v9, %s2141_s22  ;;  %167 = vrot.lane.b32.xlu0 %v2224_v6, %s2141_s22 }
  0x49   : > { %173 = vrot.lane.b32.xlu1 %v2247_v11, %s2141_s22  ;;  %171 = vrot.lane.b32.xlu0 %v2234_v8, %s2141_s22 }
  0x4d   : > { %177 = vrot.lane.b32.xlu1 %v2257_v13, %s2141_s22  ;;  %175 = vrot.lane.b32.xlu0 %v2244_v10, %s2141_s22 }
  0x51   : > { %181 = vrot.lane.b32.xlu1 %v2264_v14, %s2141_s22  ;;  %179 = vrot.lane.b32.xlu0 %v2254_v12, %s2141_s22 }
  0x8b   : > { %v206_v15 = vpop.permute.xlu1 %205  ;;  %v202_v16 = vpop.permute.xlu0 %201 }
  0x8f   : > { %v2283_v17 = vpop.permute.xlu1 %207  ;;  %v204_v18 = vpop.permute.xlu0 %203 }
  0x90   : > { %v245_v41 = vsel %vm231_vm0, %v202_v16, %v204_v18  ;;  %v243_v29 = vsel %vm231_vm0, %v206_v15, %v2283_v17  ;;  %v244_v34 = vsel %vm231_vm0, %v204_v18, %v206_v15 }
  0x91   : > { %v2339_v47 = vsel %vm2319_vm1, %v2207_v3, %v245_v41  ;;  %v294_v45 = vsel %vm2373_vm4, %v2204_v2, %v243_v29  ;;  %v4397_v29 = vmov 0 }
  0x92   : > { %v2358_v58 = vadd.f32 1e-08, %v2339_v47 }
  0x93   : > { %v2285_v20 = vpop.permute.xlu1 %211  ;;  %v2287_v21 = vpop.permute.xlu0 %209 }
  0x94   : > { %4376 = vst [vmem:[#allocation9_spill] sm:$0xff] %v2358_v58 }
  0x97   : > { %v216_v23 = vpop.permute.xlu1 %215  ;;  %v214_v24 = vpop.permute.xlu0 %213 }
  0x98   : > { %v2294_v25 = vsel %vm231_vm0, %v214_v24, %v216_v23  ;;  %v2299_v26 = vsel %vm231_vm0, %v2285_v20, %v214_v24 }
  0x9b   : > { %v220_v27 = vpop.permute.xlu1 %219  ;;  %v218_v28 = vpop.permute.xlu0 %217 }
  0x9c   : > { %v2304_v30 = vsel %vm231_vm0, %v218_v28, %v220_v27  ;;  %v2308_v31 = vsel %vm231_vm0, %v216_v23, %v218_v28  ;;  %v268_v23 = vand.u32 1, %v253_v53  ;;  %v4378_v28 = vmov 0 }
  0x9d   : > { %v4379_v28 = vsel %vm2373_vm4, 4294967295, %v4378_v28 }
  0x9e   : > { %4380 = vst [vmem:[#allocation11_spill] sm:$0xff] %v4379_v28  ;;  %vm2467_vm9 = vcmp.eq.s32.totalorder %v268_v23, 0 }
  0x9f   : > { %v224_v32 = vpop.permute.xlu1 %223  ;;  %v222_v33 = vpop.permute.xlu0 %221  ;;  %v4403_v40 = vsel %vm2467_vm9, 4294967295, %v4402_v40 }
  0xa0   : > { %v2312_v35 = vsel %vm231_vm0, %v222_v33, %v224_v32  ;;  %v2316_v36 = vsel %vm231_vm0, %v220_v27, %v222_v33  ;;  %v254_v33 = vadd.s32 1024, %v2289_v22  ;;  %4404 = vst [vmem:[#allocation25_spill] sm:$0xff] %v4403_v40 }
  0xa2   : > { %v269_v59 = vand.u32 1, %v254_v33 }
  0xa3   : > { %v228_v37 = vpop.permute.xlu1 %227  ;;  %v226_v38 = vpop.permute.xlu0 %225 }
  0xa4   : > { %v2327_v42 = vsel %vm231_vm0, %v226_v38, %v228_v37  ;;  %v2331_v43 = vsel %vm231_vm0, %v224_v32, %v226_v38  ;;  %v4381_v32 = vmov 0  ;;  %v4385_v38 = vmov 0 }
  0xa5   : > { %v4382_v32 = vsel %vm2380_vm5, 4294967295, %v4381_v32  ;;  %v4386_v38 = vsel %vm2390_vm6, 4294967295, %v4385_v38  ;;  %vm2533_vm13 = vcmp.eq.s32.totalorder %v269_v59, 0  ;;  %v2554_v59 = vmul.f32 %v294_v45, %v294_v45 }
  0xa6   : > { %4383 = vst [vmem:[#allocation12_spill] sm:$0xff] %v4382_v32  ;;  %4387 = vst [vmem:[#allocation14_spill] sm:$0xff] %v4386_v38 }
  0xa7   : > { %v2342_v49 = vpop.permute.xlu1 %153  ;;  %v230_v51 = vpop.permute.xlu0 %229 }
  0xa8   : > { %4372 = vst [vmem:[#allocation7_spill] sm:$0xff] %v2342_v49  ;;  %v2352_v54 = vsel %vm231_vm0, %v228_v37, %v230_v51  ;;  %v246_v55 = vsel %vm231_vm0, %v230_v51, %v202_v16  ;;  %v267_v16 = vand.u32 1, %v252_v52  ;;  %v2388_v37 = vand.u32 2147483647, %v2358_v58 }
  0xa9   : > { %v2363_v60 = vsel %vm2344_vm2, %v2197_v1, %v246_v55  ;;  %v293_v51 = vsel %vm2380_vm5, %v2194_v0, %v244_v34  ;;  %v2427_v52 = vadd.s32 1536, %v2289_v22 }
  0xaa   : > { %v2366_v62 = vadd.f32 1e-08, %v2363_v60  ;;  %4384 = vst [vmem:[#allocation13_spill] sm:$0xff] %v2388_v37  ;;  %vm2452_vm8 = vcmp.eq.s32.totalorder %v267_v16, 0 }
  0xab   : > { %v158_v63 = vpop.permute.xlu1 %157  ;;  %v156_v19 = vpop.permute.xlu0 %155  ;;  %v4398_v29 = vsel %vm2452_vm8, 4294967295, %v4397_v29 }
  0xac   : > { %4377 = vst [vmem:[#allocation10_spill] sm:$0xff] %v2366_v62  ;;  %v198_v24 = vsel %vm4287_vm3, %v156_v19, %v158_v63  ;;  %v199_v27 = vsel %vm4287_vm3, %v2342_v49, %v156_v19  ;;  %v2405_v44 = vand.u32 2147483647, %v2366_v62  ;;  %v2444_v19 = vadd.s32 1664, %v2289_v22  ;;  %4399 = vst [vmem:[#allocation22_spill] sm:$0xff] %v4398_v29 }
  0xad   : > { %v2397_v39 = vsel %vm2344_vm2, %v199_v27, %v2197_v1  ;;  %v2402_v41 = vsel %vm2319_vm1, %v198_v24, %v2207_v3  ;;  %v255_v1 = vadd.s32 1152, %v2289_v22  ;;  %v2421_v3 = vadd.s32 1408, %v2289_v22 }
  0xae   : > { %4388 = vst [vmem:[#allocation15_spill] sm:$0xff] %v2397_v39  ;;  %4389 = vst [vmem:[#allocation16_spill] sm:$0xff] %v2402_v41  ;;  %v2408_v15 = vand.u32 2147483647, %v2397_v39  ;;  %v2411_v18 = vand.u32 2147483647, %v2402_v41 }
  0xaf   : > { %4390 = vst [vmem:[#allocation17_spill] sm:$0xff] %v2405_v44  ;;  %v160_v48 = vpop.permute.xlu0 %159  ;;  %v2437_v56 = vpop.permute.xlu1 %161  ;;  %v2450_v27 = vadd.f32 1e-08, %v294_v45  ;;  %v2465_v49 = vadd.f32 1e-08, %v293_v51  ;;  %v270_v62 = vand.u32 1, %v255_v1 }
  0xb0   : > { %4391 = vst [vmem:[#allocation18_spill] sm:$0xff] %v2408_v15  ;;  %4392 = vst [vmem:[#allocation19_spill] sm:$0xff] %v2411_v18  ;;  %v2431_v53 = vmax.f32 %v2405_v44, %v2408_v15  ;;  %v2435_v55 = vmax.f32 %v2388_v37, %v2411_v18  ;;  %v2448_v24 = vmin.f32 %v2405_v44, %v2408_v15  ;;  %v2491_v44 = vadd.s32 1792, %v2289_v22 }
  0xb1   : > { %4396 = vst [vmem:[#allocation21_spill] sm:$0xff] %v2450_v27  ;;  %v2458_v61 = vmin.f32 %v2388_v37, %v2411_v18  ;;  %v197_v33 = vsel %vm4287_vm3, %v158_v63, %v160_v48  ;;  %4401 = vst [vmem:[#allocation24_spill] sm:$0xff] %v2465_v49  ;;  %v196_v58 = vsel %vm4287_vm3, %v160_v48, %v2437_v56  ;;  %v271_v18 = vand.u32 1, %v2418_v46 }
  0xb2   : > { %v2461_v34 = vmul.f32 0.41421357, %v2431_v53  ;;  %v2472_v16 = vmul.f32 0.41421357, %v2435_v55  ;;  %v621_v50 = vadd.f32 %v2448_v24, %v2431_v53  ;;  %v272_v63 = vand.u32 1, %v2421_v3 }
  0xb3   : > { %v241_v37 = vsel %vm231_vm0, %v2287_v21, %v2285_v20  ;;  %v242_v15 = vsel %vm231_vm0, %v2283_v17, %v2287_v21  ;;  %v2496_v1 = vsel %vm2380_vm5, %v197_v33, %v2194_v0  ;;  %v622_v20 = vadd.f32 %v2458_v61, %v2435_v55 }
  0xb4   : > { %4400 = vst [vmem:[#allocation23_spill] sm:$0xff] %v2461_v34  ;;  %4405 = vst [vmem:[#allocation26_spill] sm:$0xff] %v2472_v16  ;;  %vm4284_vm10 = vcmp.gt.f32.partialorder %v2448_v24, %v2461_v34  ;;  %vm4279_vm11 = vcmp.gt.f32.partialorder %v2458_v61, %v2472_v16  ;;  %v2507_v17 = vsel %vm2373_vm4, %v196_v58, %v2204_v2  ;;  %v2510_v21 = vand.u32 2147483647, %v2450_v27 }
  0xb5   : > { %v2513_v0 = vand.u32 2147483647, %v2465_v49  ;;  %v636_v3 = vsel %vm4284_vm10, %v621_v50, %v2431_v53  ;;  %v295_v48 = vsel %vm2390_vm6, %v2217_v5, %v242_v15  ;;  %v637_v2 = vsel %vm4279_vm11, %v622_v20, %v2435_v55 }
  0xb6   : > { %4406 = vst [vmem:[#allocation27_spill] sm:$0xff] %v2510_v21  ;;  %vm651_vm12 = vcmp.eq.f32.partialorder %v636_v3, 0.0  ;;  %v2528_v58 = vand.u32 2147483647, %v2496_v1  ;;  %v296_v33 = vsel %vm2439_vm7, %v2214_v4, %v241_v37  ;;  %v4409_v46 = vmov 0 }
  0xb7   : > { %4407 = vst [vmem:[#allocation28_spill] sm:$0xff] %v2513_v0  ;;  %v4410_v46 = vsel %vm2533_vm13, 4294967295, %v4409_v46  ;;  %vm652_vm14 = vcmp.eq.f32.partialorder %v637_v2, 0.0  ;;  %v2537_v50 = vsel %vm651_vm12, 1.0, %v636_v3  ;;  %v2540_v15 = vand.u32 2147483647, %v2507_v17 }
  0xb8   : > { %4408 = vst [vmem:[#allocation29_spill] sm:$0xff] %v2528_v58  ;;  %4411 = vst [vmem:[#allocation30_spill] sm:$0xff] %v4410_v46  ;;  %vm2542_vm15 = vcmp.eq.s32.totalorder %v270_v62, 0  ;;  %v4413_v20 = vmov 0  ;;  %v275_v23 = vand.u32 1, %v2491_v44  ;;  %v2547_v28 = vsel %vm652_vm14, 1.0, %v637_v2 }
  0xb9   : > { %4412 = vst [vmem:[#allocation31_spill] sm:$0xff] %v2540_v15  ;;  %v4414_v20 = vsel %vm2542_vm15, 4294967295, %v4413_v20  ;;  %1923 = vrcp.f32 %v2537_v50  ;;  %v2552_v37 = vmax.f32 %v2513_v0, %v2528_v58  ;;  %v2556_v3 = vadd.f32 1e-08, %v295_v48 }
  0xba   : > { %4415 = vst [vmem:[#allocation32_spill] sm:$0xff] %v4414_v20  ;;  %1925 = vrcp.f32 %v2547_v28  ;;  %v2561_v62 = vmax.f32 %v2510_v21, %v2540_v15  ;;  %v2563_v32 = vadd.f32 1e-08, %v296_v33  ;;  %v2567_v44 = vmin.f32 %v2513_v0, %v2528_v58 }
  0xbb   : > { %4416 = vst [vmem:[#allocation33_spill] sm:$0xff] %v2556_v3  ;;  %v2571_v2 = vmin.f32 %v2510_v21, %v2540_v15  ;;  %v2574_v45 = vmul.f32 0.41421357, %v2552_v37  ;;  %v322_v27 = vmul.f32 %v2339_v47, %v2339_v47  ;;  %v323_v49 = vmul.f32 %v293_v51, %v293_v51 }
  0xbc   : > { %4417 = vst [vmem:[#allocation34_spill] sm:$0xff] %v2563_v32  ;;  %v297_v16 = vsel %vm2452_vm8, %v2227_v7, %v2299_v26  ;;  %vm2582_vm0 = vcmp.eq.s32.totalorder %v271_v18, 0  ;;  %v4418_v34 = vmov 0  ;;  %vm2586_vm12 = vcmp.eq.s32.totalorder %v272_v63, 0 }
  0xbd   : > { %v4419_v34 = vsel %vm2582_vm0, 4294967295, %v4418_v34  ;;  %v4421_v58 = vmov 0  ;;  %v336_v15 = vmul.f32 %v2397_v39, %v2397_v39  ;;  %v2592_v21 = vmul.f32 %v295_v48, %v295_v48  ;;  %v2612_v48 = vpop.permute.xlu1 %165 }
  0xbe   : > { %4420 = vst [vmem:[#allocation35_spill] sm:$0xff] %v4419_v34  ;;  %v4422_v58 = vsel %vm2586_vm12, 4294967295, %v4421_v58  ;;  %v2594_v47 = vmul.f32 %v296_v33, %v296_v33  ;;  %v298_v26 = vsel %vm2467_vm9, %v2224_v6, %v2294_v25  ;;  %v337_v18 = vmul.f32 %v2402_v41, %v2402_v41  ;;  %v164_v33 = vpop.permute.xlu0 %163 }
  0xbf   : > { %4423 = vst [vmem:[#allocation36_spill] sm:$0xff] %v4422_v58  ;;  %v2603_v51 = vand.u32 2147483647, %v2556_v3  ;;  %v321_v63 = vmul.f32 %v2363_v60, %v2363_v60  ;;  %v2608_v0 = vmul.f32 0.41421357, %v2561_v62  ;;  %vm4286_vm14 = vcmp.gt.f32.partialorder %v2567_v44, %v2574_v45 }
  0xc0   : > { %v2615_v25 = vand.u32 2147483647, %v2563_v32  ;;  %v2617_v39 = vmul.f32 %v297_v16, %v297_v16  ;;  %v623_v3 = vadd.f32 %v2567_v44, %v2552_v37  ;;  %v624_v60 = vadd.f32 %v2571_v2, %v2561_v62 }
  0xc1   : > { %4424 = vst [vmem:[#allocation37_spill] sm:$0xff] %v2603_v51  ;;  %v2623_v41 = vadd.f32 1e-08, %v297_v16  ;;  %v2625_v40 = vadd.f32 1e-08, %v298_v26  ;;  %v351_v6 = vadd.f32 %v336_v15, %v321_v63  ;;  %vm4308_vm11 = vcmp.gt.f32.partialorder %v2571_v2, %v2608_v0 }
  0xc2   : > { %4425 = vst [vmem:[#allocation38_spill] sm:$0xff] %v2615_v25  ;;  %4426 = vst [vmem:[#allocation39_spill] sm:$0xff] %v2617_v39  ;;  %v352_v29 = vadd.f32 %v337_v18, %v322_v27  ;;  %v638_v32 = vsel %vm4286_vm14, %v623_v3, %v2552_v37  ;;  %v639_v39 = vsel %vm4308_vm11, %v624_v60, %v2561_v62  ;;  %v4429_v15 = vand.u32 1, %v2427_v52 }
  0xc3   : > { %4427 = vst [vmem:[#allocation40_spill] sm:$0xff] %v2623_v41  ;;  %4428 = vst [vmem:[#allocation41_spill] sm:$0xff] %v2625_v40  ;;  %v194_v16 = vsel %vm4287_vm3, %v164_v33, %v2612_v48  ;;  %v4430_v63 = vmov 0  ;;  %v338_v27 = vmul.f32 %v2496_v1, %v2496_v1  ;;  %vm653_vm4 = vcmp.eq.f32.partialorder %v638_v32, 0.0 }
  0xc4   : > { %vm2642_vm10 = vcmp.eq.s32.totalorder %v4429_v15, 0  ;;  %vm654_vm14 = vcmp.eq.f32.partialorder %v639_v39, 0.0  ;;  %v195_v3 = vsel %vm4287_vm3, %v2437_v56, %v164_v33  ;;  %v2655_v18 = vsel %vm2533_vm13, %v2237_v9, %v2308_v31 }
  0xc5   : > { %v4431_v63 = vsel %vm2642_vm10, 4294967295, %v4430_v63  ;;  %4433 = vst [vmem:[#allocation43_spill] sm:$0xff] %v2655_v18  ;;  %v2657_v52 = vsel %vm653_vm4, 1.0, %v638_v32  ;;  %v2659_v60 = vsel %vm654_vm14, 1.0, %v639_v39  ;;  %v2664_v15 = vsel %vm2390_vm6, %v195_v3, %v2217_v5 }
  0xc6   : > { %4432 = vst [vmem:[#allocation42_spill] sm:$0xff] %v4431_v63  ;;  %4434 = vst [vmem:[#allocation44_spill] sm:$0xff] %v2664_v15  ;;  %v2670_v56 = vsel %vm2542_vm15, %v2234_v8, %v2304_v30  ;;  %v4436_v33 = vand.u32 1, %v2444_v19  ;;  %v4437_v31 = vmov 0  ;;  %vm2678_vm4 = vcmp.eq.s32.totalorder %v275_v23, 0  ;;  %v1924_v3 = vpop.eup %1923 }
  0xc7   : > { %4435 = vst [vmem:[#allocation45_spill] sm:$0xff] %v2670_v56  ;;  %v4440_v32 = vmov 0  ;;  %v2682_v39 = vadd.f32 1e-08, %v351_v6  ;;  %1927 = vrcp.f32 %v2657_v52  ;;  %v2688_v5 = vsel %vm2439_vm7, %v194_v16, %v2214_v4  ;;  %v1926_v16 = vpop.eup %1925 }
  0xc8   : > { %vm2674_vm3 = vcmp.eq.s32.totalorder %v4436_v33, 0  ;;  %v4441_v32 = vsel %vm2678_vm4, 4294967295, %v4440_v32  ;;  %4443 = vst [vmem:[#allocation48_spill] sm:$0xff] %v2688_v5  ;;  %v2691_v30 = vand.u32 2147483647, %v2623_v41  ;;  %v339_v23 = vmul.f32 %v2507_v17, %v2507_v17 }
  0xc9   : > { %v4438_v31 = vsel %vm2674_vm3, 4294967295, %v4437_v31  ;;  %4442 = vst [vmem:[#allocation47_spill] sm:$0xff] %v4441_v32  ;;  %v2693_v19 = vadd.f32 1e-08, %v352_v29  ;;  %1929 = vrcp.f32 %v2659_v60  ;;  %v2699_v6 = vadd.f32 1e-08, %v2655_v18 }
  0xca   : > { %4439 = vst [vmem:[#allocation46_spill] sm:$0xff] %v4438_v31  ;;  %v353_v33 = vadd.f32 %v338_v27, %v323_v49  ;;  %v2702_v38 = vand.u32 2147483647, %v2664_v15  ;;  %v2705_v4 = vand.u32 2147483647, %v2688_v5  ;;  %v2714_v41 = vsel %vm2582_vm0, %v2247_v11, %v2316_v36 }
  0xcb   : > { %4444 = vst [vmem:[#allocation49_spill] sm:$0xff] %v2699_v6  ;;  %v2708_v29 = vadd.f32 1e-08, %v2670_v56  ;;  %4448 = vst [vmem:[#allocation53_spill] sm:$0xff] %v2714_v41  ;;  %v2720_v49 = vsel %vm2586_vm12, %v2244_v10, %v2312_v35  ;;  %v696_v27 = vmul.f32 %v1924_v3, %v2537_v50  ;;  %1931 = vrsqrt.f32 %v2682_v39 }
  0xcc   : > { %4445 = vst [vmem:[#allocation50_spill] sm:$0xff] %v2702_v38  ;;  %4446 = vst [vmem:[#allocation51_spill] sm:$0xff] %v2705_v4  ;;  %v697_v18 = vmul.f32 %v1926_v16, %v2547_v28  ;;  %v2727_v56 = vmax.f32 %v2603_v51, %v2702_v38  ;;  %v2731_v11 = vmax.f32 %v2615_v25, %v2705_v4  ;;  %v2734_v36 = vand.u32 2147483647, %v2625_v40 }
  0xcd   : > { %4447 = vst [vmem:[#allocation52_spill] sm:$0xff] %v2708_v29  ;;  %4449 = vst [vmem:[#allocation54_spill] sm:$0xff] %v2720_v49  ;;  %1933 = vrsqrt.f32 %v2693_v19  ;;  %v711_v10 = vsub.f32 2.0, %v696_v27  ;;  %v354_v35 = vadd.f32 %v339_v23, %v2554_v59  ;;  %v2738_v58 = vmul.f32 %v298_v26, %v298_v26 }
  0xce   : > { %v2741_v34 = vand.u32 2147483647, %v2699_v6  ;;  %v712_v57 = vsub.f32 2.0, %v697_v18  ;;  %v2743_v20 = vadd.f32 1e-08, %v353_v33  ;;  %v2756_v59 = vmin.f32 %v2603_v51, %v2702_v38  ;;  %v4479_v38 = vld [vmem:[#allocation10_spill] sm:$0xff] }
  0xcf   : > { %v2746_v8 = vand.u32 2147483647, %v2708_v29  ;;  %v2749_v46 = vadd.f32 1e-08, %v2714_v41  ;;  %v2752_v40 = vadd.f32 1e-08, %v2720_v49  ;;  %v726_v27 = vmul.f32 %v1924_v3, %v711_v10 }
  0xd0   : > { %4450 = vst [vmem:[#allocation55_spill] sm:$0xff] %v2741_v34  ;;  %v727_v9 = vmul.f32 %v1926_v16, %v712_v57  ;;  %v2759_v26 = vmul.f32 0.41421357, %v2727_v56  ;;  %v2762_v18 = vmul.f32 0.41421357, %v2731_v11  ;;  %v2768_v23 = vsel %vm2642_vm10, %v2257_v13, %v2331_v43 }
  0xd1   : > { %4451 = vst [vmem:[#allocation56_spill] sm:$0xff] %v2746_v8  ;;  %4452 = vst [vmem:[#allocation57_spill] sm:$0xff] %v2749_v46  ;;  %v741_v33 = vmul.f32 %v726_v27, %v2537_v50  ;;  %v2771_v3 = vadd.f32 1e-08, %v354_v35  ;;  %v2775_v57 = vmin.f32 %v2615_v25, %v2705_v4  ;;  %v591_v16 = vsub.f32 %v2448_v24, %v2431_v53  ;;  %v4460_v53 = vld [vmem:[#allocation26_spill] sm:$0xff]  ;;  %v4480_v8 = vld [vmem:[#allocation3_spill] sm:$0xff] }
  0xd2   : > { %4453 = vst [vmem:[#allocation58_spill] sm:$0xff] %v2752_v40  ;;  %4454 = vst [vmem:[#allocation59_spill] sm:$0xff] %v2759_v26  ;;  %v592_v10 = vsub.f32 %v2458_v61, %v2435_v55  ;;  %v742_v29 = vmul.f32 %v727_v9, %v2547_v28  ;;  %1935 = vrsqrt.f32 %v2743_v20  ;;  %v2787_v13 = vsel %vm2674_vm3, %v2254_v12, %v2327_v42 }
  0xd3   : > { %4455 = vst [vmem:[#allocation60_spill] sm:$0xff] %v2768_v23  ;;  %4456 = vst [vmem:[#allocation61_spill] sm:$0xff] %v2787_v13  ;;  %v2793_v43 = vsel %vm2678_vm4, %v2264_v14, %v2352_v54  ;;  %v756_v50 = vsub.f32 2.0, %v741_v33  ;;  %v625_v12 = vadd.f32 %v2756_v59, %v2727_v56  ;;  %1937 = vrsqrt.f32 %v2771_v3 }
  0xd4   : > { %4457 = vst [vmem:[#allocation62_spill] sm:$0xff] %v2793_v43  ;;  %v757_v55 = vsub.f32 2.0, %v742_v29  ;;  %v1928_v42 = vpop.eup %1927  ;;  %v626_v14 = vadd.f32 %v2775_v57, %v2731_v11  ;;  %v4458_v29 = vld [vmem:[#allocation23_spill] sm:$0xff]  ;;  %vm4461_vm11 = vcmp.gt.f32.partialorder %v2458_v61, %v4460_v53  ;;  %vm4462_vm10 = vcmp.gt.f32.partialorder %v2756_v59, %v2759_v26 }
  0xd5   : > { %v771_v35 = vmul.f32 %v756_v50, %v726_v27  ;;  %vm4459_vm14 = vcmp.gt.f32.partialorder %v2448_v24, %v4458_v29  ;;  %v607_v6 = vsel %vm4461_vm11, %v592_v10, %v2458_v61  ;;  %v698_v28 = vmul.f32 %v1928_v42, %v2657_v52 }
  0xd6   : > { %v1930_v54 = vpop.eup %1929  ;;  %v606_v33 = vsel %vm4459_vm14, %v591_v16, %v2448_v24  ;;  %v772_v31 = vmul.f32 %v757_v55, %v727_v9  ;;  %v640_v63 = vsel %vm4462_vm10, %v625_v12, %v2727_v56  ;;  %vm4463_vm14 = vcmp.gt.f32.partialorder %v2775_v57, %v2762_v18 }
  0xd7   : > { %v2816_v27 = vmul.f32 %v771_v35, %v606_v33  ;;  %v699_v50 = vmul.f32 %v1930_v54, %v2659_v60  ;;  %v641_v16 = vsel %vm4463_vm14, %v626_v14, %v2731_v11  ;;  %vm390_vm11 = vcmp.eq.f32.partialorder %v2693_v19, inf }
  0xd8   : > { %v2828_v9 = vmul.f32 %v772_v31, %v607_v6  ;;  %v713_v10 = vsub.f32 2.0, %v698_v28  ;;  %vm655_vm3 = vcmp.eq.f32.partialorder %v640_v63, 0.0  ;;  %vm656_vm4 = vcmp.eq.f32.partialorder %v641_v16, 0.0  ;;  %v1932_v55 = vpop.eup %1931 }
  0xd9   : > { %v2832_v35 = vmul.f32 %v2816_v27, %v2816_v27  ;;  %v714_v33 = vsub.f32 2.0, %v699_v50  ;;  %v2834_v32 = vsel %vm655_vm3, 1.0, %v640_v63  ;;  %v2836_v12 = vsel %vm656_vm4, 1.0, %v641_v16 }
  0xda   : > { %v1934_v49 = vpop.eup %1933  ;;  %vm385_vm10 = vcmp.eq.f32.partialorder %v2682_v39, 0.0  ;;  %v2841_v31 = vmul.f32 %v2828_v9, %v2828_v9  ;;  %v728_v6 = vmul.f32 %v1928_v42, %v713_v10  ;;  %v340_v28 = vmul.f32 %v2664_v15, %v2664_v15 }
  0xdb   : > { %1939 = vrcp.f32 %v2834_v32  ;;  %v816_v63 = vmul.f32 0.080537446, %v2832_v35  ;;  %v593_v14 = vsub.f32 %v2567_v44, %v2552_v37  ;;  %v729_v50 = vmul.f32 %v1930_v54, %v714_v33 }
  0xdc   : > { %1941 = vrcp.f32 %v2836_v12  ;;  %v382_v16 = vmul.f32 %v1932_v55, %v2682_v39  ;;  %v817_v41 = vmul.f32 0.080537446, %v2841_v31  ;;  %v743_v42 = vmul.f32 %v728_v6, %v2657_v52 }
  0xdd   : > { %v341_v10 = vmul.f32 %v2688_v5, %v2688_v5  ;;  %v389_v40 = vmul.f32 %v1934_v49, %v2693_v19  ;;  %v1702_v46 = vadd.f32 -0.13877685, %v816_v63  ;;  %v594_v43 = vsub.f32 %v2571_v2, %v2561_v62 }
  0xde   : > { %v744_v37 = vmul.f32 %v729_v50, %v2659_v60  ;;  %v1703_v54 = vadd.f32 -0.13877685, %v817_v41  ;;  %v758_v33 = vsub.f32 2.0, %v743_v42  ;;  %v355_v55 = vadd.f32 %v340_v28, %v2592_v21 }
  0xdf   : > { %v1936_v13 = vpop.eup %1935  ;;  %v846_v52 = vmul.f32 %v1702_v46, %v2832_v35  ;;  %vm4464_vm4 = vcmp.gt.f32.partialorder %v2567_v44, %v2574_v45  ;;  %vm4465_vm14 = vcmp.eq.f32.partialorder %v2682_v39, inf  ;;  %v356_v21 = vadd.f32 %v341_v10, %v2594_v47  ;;  %v2885_v47 = vpop.permute.xlu1 %169 }
  0xe0   : > { %v608_v49 = vsel %vm4464_vm4, %v593_v14, %v2567_v44  ;;  %v759_v63 = vsub.f32 2.0, %v744_v37  ;;  %v384_v41 = vsel %vm4465_vm14, %v2682_v39, %v382_v16  ;;  %v847_v62 = vmul.f32 %v1703_v54, %v2841_v31  ;;  %v1938_v37 = vpop.eup %1937  ;;  %v168_v10 = vpop.permute.xlu0 %167 }
  0xe1   : > { %v773_v60 = vmul.f32 %v758_v33, %v728_v6  ;;  %v391_v46 = vsel %vm390_vm11, %v2693_v19, %v389_v40  ;;  %v861_v28 = vadd.f32 0.19977711, %v846_v52  ;;  %vm4466_vm3 = vcmp.gt.f32.partialorder %v2571_v2, %v2608_v0 }
  0xe2   : > { %v609_v14 = vsel %vm4466_vm3, %v594_v43, %v2571_v2  ;;  %v774_v42 = vmul.f32 %v759_v63, %v729_v50  ;;  %v862_v23 = vadd.f32 0.19977711, %v847_v62  ;;  %v396_v16 = vmul.f32 %v1936_v13, %v2743_v20 }
  0xe3   : > { %v2881_v5 = vmul.f32 %v773_v60, %v608_v49  ;;  %v2883_v6 = vadd.f32 1e-08, %v355_v55  ;;  %v4467_v40 = vand.u32 2147483648, %v2682_v39  ;;  %v876_v43 = vmul.f32 %v861_v28, %v2832_v35 }
  0xe4   : > { %v2895_v33 = vmul.f32 %v774_v42, %v609_v14  ;;  %v4468_v13 = vand.u32 2147483648, %v2693_v19  ;;  %vm4469_vm11 = vcmp.eq.f32.partialorder %v2693_v19, 0.0  ;;  %v877_v52 = vmul.f32 %v862_v23, %v2841_v31 }
  0xe5   : > { %v2891_v54 = vsel %vm385_vm10, %v4467_v40, %v384_v41  ;;  %v2906_v49 = vmul.f32 %v2881_v5, %v2881_v5  ;;  %v2908_v39 = vadd.f32 1e-08, %v356_v21  ;;  %v1717_v63 = vadd.f32 -0.3333295, %v876_v43 }
  0xe6   : > { %v2901_v55 = vsel %vm4469_vm11, %v4468_v13, %v391_v46  ;;  %v2911_v41 = vmul.f32 %v1938_v37, %v2771_v3  ;;  %v2915_v62 = vmul.f32 %v2895_v33, %v2895_v33  ;;  %vm4470_vm10 = vcmp.lt.s32.totalorder %v2289_v22, 127 }
  0xe7   : > { %v192_v19 = vsel %vm4470_vm10, %v168_v10, %v2885_v47  ;;  %v1718_v60 = vadd.f32 -0.3333295, %v877_v52  ;;  %vm4471_vm14 = vcmp.eq.f32.partialorder %v2743_v20, inf  ;;  %v818_v21 = vmul.f32 0.080537446, %v2906_v49  ;;  %vm4472_vm3 = vmmov %vm4470_vm10 }
  0xe8   : > { %v2923_v23 = vsel %vm4471_vm14, %v2743_v20, %v396_v16  ;;  %1943 = vrsqrt.f32 %v2883_v6  ;;  %v1940_v46 = vpop.eup %1939  ;;  %v906_v28 = vmul.f32 %v1717_v63, %v2832_v35  ;;  %v819_v14 = vmul.f32 0.080537446, %v2915_v62  ;;  %v4473_v35 = vld [vmem:[#allocation17_spill] sm:$0xff]  ;;  %v4474_v63 = vld [vmem:[#allocation18_spill] sm:$0xff] }
  0xe9   : > { %v595_v42 = vsub.f32 %v2756_v59, %v2727_v56  ;;  %v193_v37 = vsel %vm4472_vm3, %v2612_v48, %v168_v10  ;;  %v1942_v40 = vpop.eup %1941  ;;  %v907_v16 = vmul.f32 %v1718_v60, %v2841_v31  ;;  %v1704_v43 = vadd.f32 -0.13877685, %v818_v21  ;;  %v4475_v10 = vld [vmem:[#allocation13_spill] sm:$0xff]  ;;  %v4476_v31 = vld [vmem:[#allocation19_spill] sm:$0xff] }
  0xea   : > { %1945 = vrsqrt.f32 %v2908_v39  ;;  %v700_v13 = vmul.f32 %v1940_v46, %v2834_v32  ;;  %v921_v52 = vmul.f32 %v906_v28, %v2816_v27  ;;  %vm981_vm4 = vcmp.gt.f32.partialorder %v4474_v63, %v4473_v35 }
  0xeb   : > { %v1705_v50 = vadd.f32 -0.13877685, %v819_v14  ;;  %v596_v56 = vsub.f32 %v2775_v57, %v2731_v11  ;;  %v701_v4 = vmul.f32 %v1942_v40, %v2836_v12  ;;  %v922_v48 = vmul.f32 %v907_v16, %v2828_v9 }
  0xec   : > { %v848_v60 = vmul.f32 %v1704_v43, %v2906_v49  ;;  %v715_v21 = vsub.f32 2.0, %v700_v13  ;;  %v2950_v28 = vsel %vm2452_vm8, %v193_v37, %v2227_v7  ;;  %v936_v14 = vadd.f32 %v921_v52, %v2816_v27  ;;  %v4482_v27 = vld [vmem:[#allocation9_spill] sm:$0xff] }
  0xed   : > { %v849_v15 = vmul.f32 %v1705_v50, %v2915_v62  ;;  %vm4478_vm10 = vcmp.gt.f32.partialorder %v2756_v59, %v2759_v26  ;;  %v716_v16 = vsub.f32 2.0, %v701_v4  ;;  %v937_v43 = vadd.f32 %v922_v48, %v2828_v9 }
  0xee   : > { %v610_v11 = vsel %vm4478_vm10, %v595_v42, %v2756_v59  ;;  %v863_v13 = vadd.f32 0.19977711, %v848_v60  ;;  %v730_v51 = vmul.f32 %v1940_v46, %v715_v21  ;;  %v2963_v7 = vsel %vm2467_vm9, %v192_v19, %v4480_v8  ;;  %v4485_v19 = vld [vmem:[#allocation15_spill] sm:$0xff] }
  0xef   : > { %v951_v50 = vadd.f32 0.7853982, %v936_v14  ;;  %v864_v37 = vadd.f32 0.19977711, %v849_v15  ;;  %v731_v52 = vmul.f32 %v1942_v40, %v716_v16  ;;  %v2967_v42 = vand.u32 2147483647, %v2950_v28 }
  0xf0   : > { %v952_v4 = vadd.f32 0.7853982, %v937_v43  ;;  %v878_v26 = vmul.f32 %v863_v13, %v2906_v49  ;;  %vm4483_vm10 = vcmp.gt.f32.partialorder %v2775_v57, %v2762_v18  ;;  %v745_v46 = vmul.f32 %v730_v51, %v2834_v32  ;;  %v4487_v32 = vld [vmem:[#allocation16_spill] sm:$0xff] }
  0xf1   : > { %v611_v9 = vsel %vm4483_vm10, %v596_v56, %v2775_v57  ;;  %vm4484_vm14 = vcmp.gt.f32.partialorder %v2448_v24, %v4458_v29  ;;  %vm1071_vm3 = vcmp.lt.f32.partialorder %v4485_v19, 0.0  ;;  %v879_v15 = vmul.f32 %v864_v37, %v2915_v62 }
  0xf2   : > { %v966_v8 = vsel %vm4484_vm14, %v951_v50, %v936_v14  ;;  %v746_v40 = vmul.f32 %v731_v52, %v2836_v12  ;;  %v2982_v48 = vand.u32 2147483647, %v2963_v7  ;;  %vm4486_vm11 = vcmp.gt.f32.partialorder %v2458_v61, %v4460_v53 }
  0xf3   : > { %v967_v56 = vsel %vm4486_vm11, %v952_v4, %v937_v43  ;;  %v996_v60 = vsub.f32 1.5707964, %v966_v8  ;;  %vm1072_vm10 = vcmp.lt.f32.partialorder %v4487_v32, 0.0  ;;  %v1719_v21 = vadd.f32 -0.3333295, %v878_v26 }
  0xf4   : > { %v760_v24 = vsub.f32 2.0, %v745_v46  ;;  %v997_v29 = vsub.f32 1.5707964, %v967_v56  ;;  %v1720_v14 = vadd.f32 -0.3333295, %v879_v15  ;;  %v761_v16 = vsub.f32 2.0, %v746_v40 }
  0xf5   : > { %v2992_v12 = vmax.f32 %v2691_v30, %v2967_v42  ;;  %v1011_v13 = vsel %vm981_vm4, %v996_v60, %v966_v8  ;;  %v908_v61 = vmul.f32 %v1719_v21, %v2906_v49  ;;  %v3000_v26 = vmin.f32 %v2691_v30, %v2967_v42  ;;  %v3002_v43 = vpop.eup %1943  ;;  %v4489_v49 = vld [vmem:[#allocation28_spill] sm:$0xff]  ;;  %v4490_v46 = vld [vmem:[#allocation29_spill] sm:$0xff]  ;;  %v4493_v40 = vld [vmem:[#allocation31_spill] sm:$0xff] }
  0xf6   : > { %v775_v53 = vmul.f32 %v760_v24, %v730_v51  ;;  %vm4488_vm11 = vcmp.gt.f32.partialorder %v4476_v31, %v4475_v10  ;;  %v1041_v37 = vsub.f32 3.1415927, %v1011_v13  ;;  %v909_v4 = vmul.f32 %v1720_v14, %v2915_v62 }
  0xf7   : > { %v1012_v50 = vsel %vm4488_vm11, %v997_v29, %v967_v56  ;;  %v776_v35 = vmul.f32 %v761_v16, %v731_v52  ;;  %v923_v51 = vmul.f32 %v908_v61, %v2881_v5  ;;  %v3018_v15 = vmax.f32 %v2734_v36, %v2982_v48  ;;  %v3020_v10 = vpop.eup %1945  ;;  %v4492_v52 = vld [vmem:[#allocation27_spill] sm:$0xff]  ;;  %v4495_v29 = vld [vmem:[#allocation24_spill] sm:$0xff] }
  0xf8   : > { %v1042_v63 = vsub.f32 3.1415927, %v1012_v50  ;;  %v3014_v8 = vmul.f32 %v775_v53, %v610_v11  ;;  %vm4491_vm11 = vcmp.lt.f32.partialorder %v4479_v38, 0.0  ;;  %v924_v31 = vmul.f32 %v909_v4, %v2895_v33 }
  0xf9   : > { %v1056_v62 = vsel %vm4491_vm11, %v1041_v37, %v1011_v13  ;;  %vm984_vm4 = vcmp.gt.f32.partialorder %v4493_v40, %v4492_v52  ;;  %v3027_v56 = vmul.f32 %v776_v35, %v611_v9  ;;  %v3031_v11 = vmin.f32 %v2734_v36, %v2982_v48  ;;  %v4496_v13 = vld [vmem:[#allocation21_spill] sm:$0xff] }
  0xfa   : > { %vm4494_vm14 = vcmp.lt.f32.partialorder %v4482_v27, 0.0  ;;  %v1086_v21 = vsub.f32 0.0, %v1056_v62  ;;  %v938_v24 = vadd.f32 %v923_v51, %v2881_v5  ;;  %v3038_v38 = vmul.f32 %v3014_v8, %v3014_v8 }
  0xfb   : > { %v1057_v60 = vsel %vm4494_vm14, %v1042_v63, %v1012_v50  ;;  %v939_v9 = vadd.f32 %v924_v31, %v2895_v33  ;;  %v3044_v16 = vmul.f32 %v3027_v56, %v3027_v56  ;;  %v3047_v27 = vmul.f32 0.41421357, %v2992_v12 }
  0xfc   : > { %v1087_v14 = vsub.f32 0.0, %v1057_v60  ;;  %v1101_v5 = vsel %vm1071_vm3, %v1086_v21, %v1056_v62  ;;  %v953_v61 = vadd.f32 0.7853982, %v938_v24  ;;  %v820_v53 = vmul.f32 0.080537446, %v3038_v38 }
  0xfd   : > { %v3054_v50 = vmul.f32 0.41421357, %v3018_v15  ;;  %v1116_v4 = vsel %vm2344_vm2, %v2891_v54, %v1101_v5  ;;  %v954_v35 = vadd.f32 0.7853982, %v939_v9  ;;  %v821_v63 = vmul.f32 0.080537446, %v3044_v16 }
  0xfe   : > { %v1102_v33 = vsel %vm1072_vm10, %v1087_v14, %v1057_v60  ;;  %1131 = vst [vmem:[%s3066_s25] sm:$0xff] %v1116_v4  ;;  %v4499_v32 = vand.u32 2147483648, %v2743_v20  ;;  %vm4500_vm3 = vcmp.eq.f32.partialorder %v2743_v20, 0.0  ;;  %vm4501_vm2 = vcmp.gt.f32.partialorder %v2567_v44, %v2574_v45 }
  0xff   : > { %v1117_v19 = vsel %vm2319_vm1, %v2901_v55, %v1102_v33  ;;  %v968_v54 = vsel %vm4501_vm2, %v953_v61, %v938_v24  ;;  %vm1073_vm10 = vcmp.lt.f32.partialorder %v2496_v1, 0.0  ;;  %v1706_v31 = vadd.f32 -0.13877685, %v820_v53 }
 0x100   : > { %v401_v62 = vsel %vm4500_vm3, %v4499_v32, %v2923_v23  ;;  %1132 = vst [vmem:[%s3066_s25 + $0x8] sm:$0xff] %v1117_v19  ;;  %vm4502_vm14 = vcmp.gt.f32.partialorder %v2571_v2, %v2608_v0  ;;  %v998_v60 = vsub.f32 1.5707964, %v968_v54  ;;  %v1707_v21 = vadd.f32 -0.13877685, %v821_v63  ;;  %v3125_v19 = vpop.permute.xlu1 %173  ;;  %v172_v32 = vpop.permute.xlu0 %171 }
 0x101   : > { %v969_v55 = vsel %vm4502_vm14, %v954_v35, %v939_v9  ;;  %vm4341_vm3 = vcmp.gt.f32.partialorder %v3000_v26, %v3047_v27  ;;  %v850_v44 = vmul.f32 %v1706_v31, %v3038_v38  ;;  %vm4340_vm2 = vcmp.gt.f32.partialorder %v3031_v11, %v3054_v50 }
 0x102   : > { %v999_v20 = vsub.f32 1.5707964, %v969_v55  ;;  %v627_v45 = vadd.f32 %v3000_v26, %v2992_v12  ;;  %vm4503_vm14 = vcmp.eq.f32.partialorder %v2771_v3, inf  ;;  %vm4504_vm11 = vcmp.gt.f32.partialorder %v4490_v46, %v4489_v49 }
 0x103   : > { %v405_v0 = vsel %vm4503_vm14, %v2771_v3, %v2911_v41  ;;  %v1013_v2 = vsel %vm4504_vm11, %v998_v60, %v968_v54  ;;  %v851_v23 = vmul.f32 %v1707_v21, %v3044_v16  ;;  %v628_v24 = vadd.f32 %v3031_v11, %v3018_v15 }
 0x104   : > { %v1014_v14 = vsel %vm984_vm4, %v999_v20, %v969_v55  ;;  %v1043_v9 = vsub.f32 3.1415927, %v1013_v2  ;;  %v865_v5 = vadd.f32 0.19977711, %v850_v44  ;;  %v642_v41 = vsel %vm4341_vm3, %v627_v45, %v2992_v12  ;;  %v4511_v45 = vld [vmem:[#allocation11_spill] sm:$0xff]  ;;  %v4529_v20 = vld [vmem:[#allocation50_spill] sm:$0xff] }
 0x105   : > { %v1044_v61 = vsub.f32 3.1415927, %v1014_v14  ;;  %v866_v53 = vadd.f32 0.19977711, %v851_v23  ;;  %v643_v49 = vsel %vm4340_vm2, %v628_v24, %v3018_v15  ;;  %vm657_vm11 = vcmp.eq.f32.partialorder %v642_v41, 0.0 }
 0x106   : > { %vm4505_vm14 = vcmp.lt.f32.partialorder %v4495_v29, 0.0  ;;  %v880_v52 = vmul.f32 %v865_v5, %v3038_v38  ;;  %vm658_vm4 = vcmp.eq.f32.partialorder %v643_v49, 0.0  ;;  %v3115_v40 = vsel %vm657_vm11, 1.0, %v642_v41  ;;  %v4519_v5 = vld [vmem:[#allocation4_spill] sm:$0xff] }
 0x107   : > { %v1058_v46 = vsel %vm4505_vm14, %v1043_v9, %v1013_v2  ;;  %vm4506_vm1 = vcmp.lt.f32.partialorder %v4496_v13, 0.0  ;;  %v881_v4 = vmul.f32 %v866_v53, %v3044_v16  ;;  %v3120_v35 = vsel %vm658_vm4, 1.0, %v643_v49 }
 0x108   : > { %v1059_v33 = vsel %vm4506_vm1, %v1044_v61, %v1014_v14  ;;  %v1088_v37 = vsub.f32 0.0, %v1058_v46  ;;  %v1721_v51 = vadd.f32 -0.3333295, %v880_v52  ;;  %v342_v29 = vmul.f32 %v2950_v28, %v2950_v28 }
 0x109   : > { %v1089_v63 = vsub.f32 0.0, %v1059_v33  ;;  %1947 = vrcp.f32 %v3115_v40  ;;  %v1722_v54 = vadd.f32 -0.3333295, %v881_v4  ;;  %v343_v31 = vmul.f32 %v2963_v7, %v2963_v7 }
 0x10a   : > { %v1103_v13 = vsel %vm1073_vm10, %v1088_v37, %v1058_v46  ;;  %1949 = vrcp.f32 %v3120_v35  ;;  %v4507_v55 = vand.u32 2147483648, %v2771_v3  ;;  %vm4508_vm1 = vcmp.eq.f32.partialorder %v2771_v3, 0.0  ;;  %v4523_v37 = vld [vmem:[#allocation33_spill] sm:$0xff] }
 0x10b   : > { %vm4509_vm11 = vcmp.lt.f32.partialorder %v2507_v17, 0.0  ;;  %v1118_v44 = vsel %vm2380_vm5, %v401_v62, %v1103_v13  ;;  %v910_v1 = vmul.f32 %v1721_v51, %v3038_v38  ;;  %vm4512_vm10 = vnez %v4511_v45  ;;  %v4515_v62 = vld [vmem:[#allocation39_spill] sm:$0xff]  ;;  %v4516_v38 = vld [vmem:[#allocation5_spill] sm:$0xff]  ;;  %v4532_v45 = vld [vmem:[#allocation38_spill] sm:$0xff] }
 0x10c   : > { %v408_v60 = vsel %vm4508_vm1, %v4507_v55, %v405_v0  ;;  %v1104_v21 = vsel %vm4509_vm11, %v1089_v63, %v1059_v33  ;;  %1133 = vst [vmem:[%s3066_s25 + $0x10] sm:$0xff] %v1118_v44  ;;  %v911_v23 = vmul.f32 %v1722_v54, %v3044_v16  ;;  %vm4513_vm14 = vcmp.lt.s32.totalorder %v2289_v22, 127  ;;  %v4524_v63 = vld [vmem:[#allocation34_spill] sm:$0xff]  ;;  %v4526_v55 = vld [vmem:[#allocation59_spill] sm:$0xff]  ;;  %v4530_v44 = vld [vmem:[#allocation44_spill] sm:$0xff] }
 0x10d   : > { %v1119_v2 = vsel %vm4512_vm10, %v408_v60, %v1104_v21  ;;  %v190_v24 = vsel %vm4513_vm14, %v172_v32, %v3125_v19  ;;  %vm4514_vm4 = vmmov %vm4513_vm14  ;;  %v925_v3 = vmul.f32 %v910_v1, %v3014_v8  ;;  %v357_v0 = vadd.f32 %v342_v29, %v4515_v62  ;;  %v4528_v21 = vld [vmem:[#allocation37_spill] sm:$0xff] }
 0x10e   : > { %v191_v17 = vsel %vm4514_vm4, %v2885_v47, %v172_v32  ;;  %1134 = vst [vmem:[%s3066_s25 + $0x18] sm:$0xff] %v1119_v2  ;;  %v3162_v41 = vsel %vm2542_vm15, %v190_v24, %v4519_v5  ;;  %v410_v61 = vmul.f32 %v3002_v43, %v2883_v6  ;;  %v926_v47 = vmul.f32 %v911_v23, %v3027_v56  ;;  %v4533_v2 = vld [vmem:[#allocation51_spill] sm:$0xff]  ;;  %v4534_v24 = vld [vmem:[#allocation48_spill] sm:$0xff] }
 0x10f   : > { %v3157_v9 = vsel %vm2533_vm13, %v191_v17, %v4516_v38  ;;  %v358_v53 = vadd.f32 %v343_v31, %v2738_v58  ;;  %vm411_vm5 = vcmp.eq.f32.partialorder %v2883_v6, inf  ;;  %v417_v46 = vmul.f32 %v3020_v10, %v2908_v39 }
 0x110   : > { %4518 = vst [vmem:[#allocation23_spill] sm:$0xff] %v3157_v9  ;;  %v3169_v49 = vand.u32 2147483647, %v3157_v9  ;;  %v940_v52 = vadd.f32 %v925_v3, %v3014_v8  ;;  %v3176_v33 = vand.u32 2147483647, %v3162_v41  ;;  %vm413_vm11 = vcmp.eq.f32.partialorder %v2883_v6, 0.0 }
 0x111   : > { %v414_v43 = vand.u32 2147483648, %v2883_v6  ;;  %v941_v58 = vadd.f32 %v926_v47, %v3027_v56  ;;  %vm418_vm14 = vcmp.eq.f32.partialorder %v2908_v39, inf  ;;  %vm420_vm4 = vcmp.eq.f32.partialorder %v2908_v39, 0.0  ;;  %v4525_v56 = vld [vmem:[#allocation56_spill] sm:$0xff] }
 0x112   : > { %4521 = vst [vmem:[#allocation26_spill] sm:$0xff] %v3169_v49  ;;  %4522 = vst [vmem:[#allocation17_spill] sm:$0xff] %v3176_v33  ;;  %v3184_v4 = vmax.f32 %v2741_v34, %v3169_v49  ;;  %v955_v8 = vadd.f32 0.7853982, %v940_v52  ;;  %v3189_v10 = vadd.f32 1e-08, %v357_v0  ;;  %v412_v51 = vsel %vm411_vm5, %v2883_v6, %v410_v61 }
 0x113   : > { %v956_v29 = vadd.f32 0.7853982, %v941_v58  ;;  %v3192_v32 = vadd.f32 1e-08, %v358_v53  ;;  %v3196_v13 = vmax.f32 %v4525_v56, %v3176_v33  ;;  %v419_v54 = vsel %vm418_vm14, %v2908_v39, %v417_v46 }
 0x114   : > { %v421_v31 = vand.u32 2147483648, %v2908_v39  ;;  %vm4527_vm2 = vcmp.gt.f32.partialorder %v2756_v59, %v4526_v55  ;;  %vm985_vm3 = vcmp.gt.f32.partialorder %v4529_v20, %v4528_v21  ;;  %vm1075_vm5 = vcmp.lt.f32.partialorder %v4530_v44, 0.0 }
 0x115   : > { %v970_v60 = vsel %vm4527_vm2, %v955_v8, %v940_v52  ;;  %vm4531_vm10 = vcmp.gt.f32.partialorder %v2775_v57, %v2762_v18  ;;  %vm986_vm1 = vcmp.gt.f32.partialorder %v4533_v2, %v4532_v45  ;;  %vm1076_vm14 = vcmp.lt.f32.partialorder %v4534_v24, 0.0 }
 0x116   : > { %v971_v1 = vsel %vm4531_vm10, %v956_v29, %v941_v58  ;;  %v1000_v23 = vsub.f32 1.5707964, %v970_v60  ;;  %v3213_v17 = vmul.f32 0.41421357, %v3184_v4  ;;  %v415_v59 = vsel %vm413_vm11, %v414_v43, %v412_v51  ;;  %v1948_v18 = vpop.eup %1947  ;;  %v3244_v29 = vpop.permute.xlu1 %177 }
 0x117   : > { %v1001_v3 = vsub.f32 1.5707964, %v971_v1  ;;  %1951 = vrsqrt.f32 %v3189_v10  ;;  %v3220_v62 = vmin.f32 %v2741_v34, %v3169_v49  ;;  %v422_v57 = vsel %vm420_vm4, %v421_v31, %v419_v54  ;;  %v1950_v5 = vpop.eup %1949  ;;  %v176_v54 = vpop.permute.xlu0 %175 }
 0x118   : > { %v1015_v0 = vsel %vm985_vm3, %v1000_v23, %v970_v60  ;;  %1953 = vrsqrt.f32 %v3192_v32  ;;  %v3226_v38 = vmul.f32 0.41421357, %v3196_v13  ;;  %v702_v47 = vmul.f32 %v1948_v18, %v3115_v40 }
 0x119   : > { %v1016_v6 = vsel %vm986_vm1, %v1001_v3, %v971_v1  ;;  %v1045_v61 = vsub.f32 3.1415927, %v1015_v0  ;;  %v3231_v53 = vmin.f32 %v4525_v56, %v3176_v33  ;;  %v597_v39 = vsub.f32 %v3000_v26, %v2992_v12 }
 0x11a   : > { %v1046_v46 = vsub.f32 3.1415927, %v1016_v6  ;;  %v703_v52 = vmul.f32 %v1950_v5, %v3120_v35  ;;  %vm4361_vm3 = vcmp.gt.f32.partialorder %v3220_v62, %v3213_v17  ;;  %vm4535_vm2 = vcmp.lt.f32.partialorder %v4523_v37, 0.0  ;;  %v3411_v56 = vpop.permute.xlu1 %181 }
 0x11b   : > { %v1060_v43 = vsel %vm4535_vm2, %v1045_v61, %v1015_v0  ;;  %v598_v58 = vsub.f32 %v3031_v11, %v3018_v15  ;;  %v717_v8 = vsub.f32 2.0, %v702_v47  ;;  %v629_v51 = vadd.f32 %v3220_v62, %v3184_v4 }
 0x11c   : > { %vm4536_vm1 = vcmp.lt.f32.partialorder %v4524_v63, 0.0  ;;  %v1090_v31 = vsub.f32 0.0, %v1060_v43  ;;  %v718_v55 = vsub.f32 2.0, %v703_v52  ;;  %vm4360_vm11 = vcmp.gt.f32.partialorder %v3231_v53, %v3226_v38  ;;  %v4562_v52 = vld [vmem:[#allocation54_spill] sm:$0xff] }
 0x11d   : > { %v1061_v12 = vsel %vm4536_vm1, %v1046_v46, %v1016_v6  ;;  %v732_v60 = vmul.f32 %v1948_v18, %v717_v8  ;;  %v630_v15 = vadd.f32 %v3231_v53, %v3196_v13  ;;  %v644_v21 = vsel %vm4361_vm3, %v629_v51, %v3184_v4  ;;  %v1984_v46 = vld [vmem:[%s2191_s20 + $0x58] sm:$0xff]  ;;  %v4557_v18 = vld [vmem:[#allocation43_spill] sm:$0xff] }
 0x11e   : > { %v1091_v37 = vsub.f32 0.0, %v1061_v12  ;;  %v1105_v63 = vsel %vm1075_vm5, %v1090_v31, %v1060_v43  ;;  %v733_v20 = vmul.f32 %v1950_v5, %v718_v55  ;;  %vm659_vm10 = vcmp.eq.f32.partialorder %v644_v21, 0.0  ;;  %v4543_v8 = vld [vmem:[#allocation60_spill] sm:$0xff] }
 0x11f   : > { %vm4537_vm4 = vcmp.lt.s32.totalorder %v2289_v22, 127  ;;  %v1120_v23 = vsel %vm2390_vm6, %v415_v59, %v1105_v63  ;;  %v747_v3 = vmul.f32 %v732_v60, %v3115_v40  ;;  %v645_v44 = vsel %vm4360_vm11, %v630_v15, %v3196_v13 }
 0x120   : > { %v188_v1 = vsel %vm4537_vm4, %v176_v54, %v3244_v29  ;;  %v1106_v45 = vsel %vm1076_vm14, %v1091_v37, %v1061_v12  ;;  %1135 = vst [vmem:[%s3066_s25 + $0x20] sm:$0xff] %v1120_v23  ;;  %v748_v5 = vmul.f32 %v733_v20, %v3120_v35  ;;  %vm660_vm5 = vcmp.eq.f32.partialorder %v645_v44, 0.0  ;;  %vm4540_vm6 = vmmov %vm4537_vm4  ;;  %v4555_v23 = vld [vmem:[#allocation58_spill] sm:$0xff] }
 0x121   : > { %v1121_v0 = vsel %vm2439_vm7, %v422_v57, %v1106_v45  ;;  %v3274_v24 = vsel %vm659_vm10, 1.0, %v644_v21  ;;  %v762_v6 = vsub.f32 2.0, %v747_v3  ;;  %v3277_v59 = vsel %vm660_vm5, 1.0, %v645_v44  ;;  %v1983_v57 = vld [vmem:[%s2191_s20 + $0x50] sm:$0xff]  ;;  %v4548_v21 = vld [vmem:[#allocation61_spill] sm:$0xff] }
 0x122   : > { %1136 = vst [vmem:[%s3066_s25 + $0x28] sm:$0xff] %v1121_v0  ;;  %1955 = vrcp.f32 %v3274_v24  ;;  %v189_v40 = vsel %vm4540_vm6, %v3125_v19, %v176_v54  ;;  %v763_v61 = vsub.f32 2.0, %v748_v5  ;;  %v3292_v43 = vsel %vm2586_vm12, %v188_v1, %v1984_v46  ;;  %v4550_v1 = vld [vmem:[#allocation62_spill] sm:$0xff]  ;;  %v4558_v5 = vld [vmem:[#allocation45_spill] sm:$0xff] }
 0x123   : > { %1957 = vrcp.f32 %v3277_v59  ;;  %v3287_v35 = vsel %vm2582_vm0, %v189_v40, %v1983_v57  ;;  %v3295_v51 = vadd.f32 1e-08, %v4543_v8  ;;  %v777_v12 = vmul.f32 %v762_v6, %v732_v60  ;;  %v4559_v40 = vld [vmem:[#allocation53_spill] sm:$0xff] }
 0x124   : > { %v1952_v31 = vpop.eup %1951  ;;  %vm4545_vm7 = vcmp.gt.f32.partialorder %v3000_v26, %v3047_v27  ;;  %v778_v54 = vmul.f32 %v763_v61, %v733_v20  ;;  %v3302_v55 = vand.u32 2147483647, %v3287_v35  ;;  %v3305_v37 = vand.u32 2147483647, %v3292_v43  ;;  %v4553_v20 = vld [vmem:[#allocation57_spill] sm:$0xff] }
 0x125   : > { %4544 = vst [vmem:[#allocation18_spill] sm:$0xff] %v3295_v51  ;;  %v612_v19 = vsel %vm4545_vm7, %v597_v39, %v3000_v26  ;;  %v1954_v15 = vpop.eup %1953  ;;  %v3308_v63 = vadd.f32 1e-08, %v4548_v21  ;;  %v3311_v45 = vadd.f32 1e-08, %v4550_v1  ;;  %vm4552_vm14 = vcmp.gt.f32.partialorder %v3031_v11, %v3054_v50 }
 0x126   : > { %4546 = vst [vmem:[#allocation13_spill] sm:$0xff] %v3302_v55  ;;  %4547 = vst [vmem:[#allocation19_spill] sm:$0xff] %v3305_v37  ;;  %v613_v60 = vsel %vm4552_vm14, %v598_v58, %v3031_v11  ;;  %v3317_v39 = vmul.f32 %v777_v12, %v612_v19  ;;  %v3320_v2 = vand.u32 2147483647, %v4553_v20  ;;  %v3323_v3 = vand.u32 2147483647, %v4555_v23 }
 0x127   : > { %4549 = vst [vmem:[#allocation10_spill] sm:$0xff] %v3308_v63  ;;  %4551 = vst [vmem:[#allocation3_spill] sm:$0xff] %v3311_v45  ;;  %v3325_v44 = vmul.f32 %v778_v54, %v613_v60  ;;  %v329_v0 = vmul.f32 %v4557_v18, %v4557_v18  ;;  %v3331_v6 = vmul.f32 %v4558_v5, %v4558_v5  ;;  %v3340_v57 = vand.u32 2147483647, %v3295_v51 }
 0x128   : > { %4554 = vst [vmem:[#allocation25_spill] sm:$0xff] %v3320_v2  ;;  %4556 = vst [vmem:[#allocation9_spill] sm:$0xff] %v3323_v3  ;;  %v3335_v58 = vmul.f32 %v4559_v40, %v4559_v40  ;;  %v807_v61 = vmul.f32 %v3317_v39, %v3317_v39  ;;  %v3346_v12 = vmax.f32 %v3320_v2, %v3302_v55  ;;  %v3353_v54 = vand.u32 2147483647, %v3308_v63 }
 0x129   : > { %4560 = vst [vmem:[#allocation15_spill] sm:$0xff] %v3340_v57  ;;  %v808_v46 = vmul.f32 %v3325_v44, %v3325_v44  ;;  %v3350_v19 = vmax.f32 %v3323_v3, %v3305_v37  ;;  %v3356_v60 = vand.u32 2147483647, %v3311_v45  ;;  %v3360_v5 = vmin.f32 %v3320_v2, %v3302_v55 }
 0x12a   : > { %4561 = vst [vmem:[#allocation16_spill] sm:$0xff] %v3353_v54  ;;  %v822_v18 = vmul.f32 0.080537446, %v807_v61  ;;  %v424_v40 = vmul.f32 %v1952_v31, %v3189_v10  ;;  %vm425_vm2 = vcmp.eq.f32.partialorder %v3189_v10, inf  ;;  %v428_v51 = vand.u32 2147483648, %v3189_v10 }
 0x12b   : > { %v823_v21 = vmul.f32 0.080537446, %v808_v46  ;;  %vm432_vm1 = vcmp.eq.f32.partialorder %v3192_v32, inf  ;;  %v344_v63 = vmul.f32 %v3157_v9, %v3157_v9  ;;  %v3370_v45 = vmin.f32 %v3323_v3, %v3305_v37 }
 0x12c   : > { %v1708_v8 = vadd.f32 -0.13877685, %v822_v18  ;;  %v3374_v47 = vmul.f32 %v4562_v52, %v4562_v52  ;;  %v3377_v23 = vmul.f32 0.41421357, %v3346_v12  ;;  %v3380_v55 = vmul.f32 0.41421357, %v3350_v19 }
 0x12d   : > { %v1709_v31 = vadd.f32 -0.13877685, %v823_v21  ;;  %v435_v18 = vand.u32 2147483648, %v3192_v32  ;;  %v631_v20 = vadd.f32 %v3360_v5, %v3346_v12  ;;  %v632_v37 = vadd.f32 %v3370_v45, %v3350_v19 }
 0x12e   : > { %v852_v2 = vmul.f32 %v1708_v8, %v807_v61  ;;  %v426_v52 = vsel %vm425_vm2, %v3189_v10, %v424_v40  ;;  %vm4363_vm10 = vcmp.gt.f32.partialorder %v3360_v5, %v3377_v23  ;;  %vm4362_vm4 = vcmp.gt.f32.partialorder %v3370_v45, %v3380_v55 }
 0x12f   : > { %v1956_v3 = vpop.eup %1955  ;;  %v853_v21 = vmul.f32 %v1709_v31, %v808_v46  ;;  %vm427_vm5 = vcmp.eq.f32.partialorder %v3189_v10, 0.0  ;;  %v431_v8 = vmul.f32 %v1954_v15, %v3192_v32  ;;  %v359_v14 = vadd.f32 %v344_v63, %v329_v0 }
 0x130   : > { %v1958_v1 = vpop.eup %1957  ;;  %v867_v16 = vadd.f32 0.19977711, %v852_v2  ;;  %v704_v54 = vmul.f32 %v1956_v3, %v3274_v24  ;;  %vm434_vm6 = vcmp.eq.f32.partialorder %v3192_v32, 0.0  ;;  %v646_v31 = vsel %vm4363_vm10, %v631_v20, %v3346_v12 }
 0x131   : > { %v868_v57 = vadd.f32 0.19977711, %v853_v21  ;;  %v705_v40 = vmul.f32 %v1958_v1, %v3277_v59  ;;  %v647_v9 = vsel %vm4362_vm4, %v632_v37, %v3350_v19  ;;  %vm661_vm7 = vcmp.eq.f32.partialorder %v646_v31, 0.0 }
 0x132   : > { %v882_v15 = vmul.f32 %v867_v16, %v807_v61  ;;  %v719_v2 = vsub.f32 2.0, %v704_v54  ;;  %vm662_vm14 = vcmp.eq.f32.partialorder %v647_v9, 0.0  ;;  %v3407_v33 = vsel %vm661_vm7, 1.0, %v646_v31  ;;  %v4563_v31 = vld [vmem:[#allocation7_spill] sm:$0xff] }
 0x133   : > { %v883_v63 = vmul.f32 %v868_v57, %v808_v46  ;;  %v720_v0 = vsub.f32 2.0, %v705_v40  ;;  %v3409_v21 = vsel %vm662_vm14, 1.0, %v647_v9  ;;  %v345_v20 = vmul.f32 %v3162_v41, %v3162_v41 }
 0x134   : > { %v1723_v49 = vadd.f32 -0.3333295, %v882_v15  ;;  %v734_v34 = vmul.f32 %v1956_v3, %v719_v2  ;;  %1959 = vrcp.f32 %v3407_v33  ;;  %v433_v16 = vsel %vm432_vm1, %v3192_v32, %v431_v8 }
 0x135   : > { %v1724_v37 = vadd.f32 -0.3333295, %v883_v63  ;;  %v735_v57 = vmul.f32 %v1958_v1, %v720_v0  ;;  %1961 = vrcp.f32 %v3409_v21  ;;  %v3420_v54 = vadd.f32 1e-08, %v359_v14  ;;  %v1985_v63 = vld [vmem:[%s2191_s20 + $0x70] sm:$0xff] }
 0x136   : > { %v912_v9 = vmul.f32 %v1723_v49, %v807_v61  ;;  %v749_v40 = vmul.f32 %v734_v34, %v3274_v24  ;;  %vm4564_vm2 = vcmp.lt.s32.totalorder %v2289_v22, 127  ;;  %v599_v2 = vsub.f32 %v3220_v62, %v3184_v4  ;;  %v4565_v1 = vld [vmem:[#allocation47_spill] sm:$0xff] }
 0x137   : > { %v200_v3 = vsel %vm4564_vm2, %v3411_v56, %v4563_v31  ;;  %v913_v15 = vmul.f32 %v1724_v37, %v808_v46  ;;  %v750_v8 = vmul.f32 %v735_v57, %v3277_v59  ;;  %vm4566_vm1 = vnez %v4565_v1 }
 0x138   : > { %v3433_v0 = vsel %vm4566_vm1, %v200_v3, %v1985_v63  ;;  %v927_v14 = vmul.f32 %v912_v9, %v3317_v39  ;;  %v360_v49 = vadd.f32 %v345_v20, %v3331_v6  ;;  %v600_v24 = vsub.f32 %v3231_v53, %v3196_v13  ;;  %v4567_v20 = vld [vmem:[#allocation40_spill] sm:$0xff] }
 0x139   : > { %v764_v61 = vsub.f32 2.0, %v749_v40  ;;  %v3441_v46 = vsel %vm427_vm5, %v428_v51, %v426_v52  ;;  %v928_v4 = vmul.f32 %v913_v15, %v3325_v44  ;;  %v765_v59 = vsub.f32 2.0, %v750_v8 }
 0x13a   : > { %v3445_v37 = vand.u32 2147483647, %v3433_v0  ;;  %v3449_v31 = vsel %vm434_vm6, %v435_v18, %v433_v16  ;;  %v942_v6 = vadd.f32 %v927_v14, %v3317_v39  ;;  %vm987_vm7 = vcmp.gt.f32.partialorder %v2967_v42, %v2691_v30  ;;  %v4568_v18 = vld [vmem:[#allocation41_spill] sm:$0xff] }
 0x13b   : > { %v779_v13 = vmul.f32 %v764_v61, %v734_v34  ;;  %vm1032_vm14 = vcmp.lt.f32.partialorder %v4567_v20, 0.0  ;;  %v943_v10 = vadd.f32 %v928_v4, %v3325_v44  ;;  %1963 = vrsqrt.f32 %v3420_v54 }
 0x13c   : > { %v614_v51 = vsel %vm4361_vm3, %v599_v2, %v3220_v62  ;;  %v780_v32 = vmul.f32 %v765_v59, %v735_v57  ;;  %vm1033_vm5 = vcmp.lt.f32.partialorder %v4568_v18, 0.0  ;;  %v957_v52 = vadd.f32 0.7853982, %v942_v6 }
 0x13d   : > { %v3462_v39 = vadd.f32 1e-08, %v360_v49  ;;  %v615_v34 = vsel %vm4360_vm11, %v600_v24, %v3231_v53  ;;  %v3468_v16 = vmul.f32 %v779_v13, %v614_v51  ;;  %v958_v44 = vadd.f32 0.7853982, %v943_v10 }
 0x13e   : > { %v3470_v9 = vmul.f32 %v780_v32, %v615_v34  ;;  %v3474_v40 = vmax.f32 %v3356_v60, %v3445_v37  ;;  %v3478_v57 = vmin.f32 %v3356_v60, %v3445_v37  ;;  %vm4569_vm6 = vcmp.gt.f32.partialorder %v3000_v26, %v3047_v27 }
 0x13f   : > { %v972_v3 = vsel %vm4569_vm6, %v957_v52, %v942_v6  ;;  %vm988_vm2 = vcmp.gt.f32.partialorder %v2982_v48, %v2734_v36  ;;  %vm1077_vm11 = vcmp.lt.f32.partialorder %v2950_v28, 0.0  ;;  %v809_v15 = vmul.f32 %v3468_v16, %v3468_v16 }
 0x140   : > { %vm4570_vm3 = vcmp.gt.f32.partialorder %v3031_v11, %v3054_v50  ;;  %v1002_v8 = vsub.f32 1.5707964, %v972_v3  ;;  %vm1078_vm4 = vcmp.lt.f32.partialorder %v2963_v7, 0.0  ;;  %v442_v63 = vand.u32 2147483648, %v3420_v54  ;;  %v180_v7 = vpop.permute.xlu0 %179 }
 0x141   : > { %v973_v2 = vsel %vm4570_vm3, %v958_v44, %v943_v10  ;;  %v810_v26 = vmul.f32 %v3470_v9, %v3470_v9  ;;  %1965 = vrsqrt.f32 %v3462_v39  ;;  %v824_v14 = vmul.f32 0.080537446, %v809_v15  ;;  %v1960_v24 = vpop.eup %1959 }
 0x142   : > { %v1003_v27 = vsub.f32 1.5707964, %v973_v2  ;;  %v346_v49 = vmul.f32 %v3287_v35, %v3287_v35  ;;  %v1017_v11 = vsel %vm987_vm7, %v1002_v8, %v972_v3  ;;  %v3502_v61 = vmul.f32 0.41421357, %v3474_v40  ;;  %v1962_v59 = vpop.eup %1961 }
 0x143   : > { %v825_v50 = vmul.f32 0.080537446, %v810_v26  ;;  %v635_v4 = vadd.f32 %v3478_v57, %v3474_v40  ;;  %v1047_v13 = vsub.f32 3.1415927, %v1017_v11  ;;  %v1710_v10 = vadd.f32 -0.13877685, %v824_v14 }
 0x144   : > { %v1018_v6 = vsel %vm988_vm2, %v1003_v27, %v973_v2  ;;  %v706_v51 = vmul.f32 %v1960_v24, %v3407_v33  ;;  %v707_v30 = vmul.f32 %v1962_v59, %v3409_v21  ;;  %vm4364_vm3 = vcmp.gt.f32.partialorder %v3478_v57, %v3502_v61 }
 0x145   : > { %v1048_v32 = vsub.f32 3.1415927, %v1018_v6  ;;  %v1711_v52 = vadd.f32 -0.13877685, %v825_v50  ;;  %v1062_v42 = vsel %vm1032_vm14, %v1047_v13, %v1017_v11  ;;  %v854_v34 = vmul.f32 %v1710_v10, %v809_v15  ;;  %v4579_v10 = vld [vmem:[#allocation49_spill] sm:$0xff] }
 0x146   : > { %v601_v44 = vsub.f32 %v3360_v5, %v3346_v12  ;;  %v721_v36 = vsub.f32 2.0, %v706_v51  ;;  %v1092_v3 = vsub.f32 0.0, %v1062_v42  ;;  %v722_v8 = vsub.f32 2.0, %v707_v30 }
 0x147   : > { %v1063_v48 = vsel %vm1033_vm5, %v1048_v32, %v1018_v6  ;;  %v855_v2 = vmul.f32 %v1711_v52, %v810_v26  ;;  %v869_v14 = vadd.f32 0.19977711, %v854_v34  ;;  %v650_v20 = vsel %vm4364_vm3, %v635_v4, %v3474_v40 }
 0x148   : > { %v1093_v27 = vsub.f32 0.0, %v1063_v48  ;;  %v736_v50 = vmul.f32 %v1960_v24, %v721_v36  ;;  %v1107_v11 = vsel %vm1077_vm11, %v1092_v3, %v1062_v42  ;;  %v737_v13 = vmul.f32 %v1962_v59, %v722_v8  ;;  %v1964_v18 = vpop.eup %1963 }
 0x149   : > { %v870_v12 = vadd.f32 0.19977711, %v855_v2  ;;  %vm665_vm7 = vcmp.eq.f32.partialorder %v650_v20, 0.0  ;;  %v1122_v24 = vsel %vm2452_vm8, %v3441_v46, %v1107_v11  ;;  %vm439_vm14 = vcmp.eq.f32.partialorder %v3420_v54, inf }
 0x14a   : > { %v1108_v6 = vsel %vm1078_vm4, %v1093_v27, %v1063_v48  ;;  %v884_v51 = vmul.f32 %v869_v14, %v809_v15  ;;  %v751_v4 = vmul.f32 %v736_v50, %v3407_v33  ;;  %1137 = vst [vmem:[%s3066_s25 + $0x30] sm:$0xff] %v1122_v24  ;;  %v752_v32 = vmul.f32 %v737_v13, %v3409_v21 }
 0x14b   : > { %v1123_v28 = vsel %vm2467_vm9, %v3449_v31, %v1108_v6  ;;  %v885_v59 = vmul.f32 %v870_v12, %v810_v26  ;;  %v3537_v52 = vsel %vm665_vm7, 1.0, %v650_v20  ;;  %v602_v46 = vsub.f32 %v3370_v45, %v3350_v19 }
 0x14c   : > { %1138 = vst [vmem:[%s3066_s25 + $0x38] sm:$0xff] %v1123_v28  ;;  %v1725_v30 = vadd.f32 -0.3333295, %v884_v51  ;;  %v766_v42 = vsub.f32 2.0, %v751_v4  ;;  %1967 = vrcp.f32 %v3537_v52  ;;  %v438_v33 = vmul.f32 %v1964_v18, %v3420_v54  ;;  %v4577_v18 = vld [vmem:[#allocation46_spill] sm:$0xff]  ;;  %v4580_v4 = vld [vmem:[#allocation52_spill] sm:$0xff] }
 0x14d   : > { %vm441_vm8 = vcmp.eq.f32.partialorder %v3420_v54, 0.0  ;;  %v1726_v25 = vadd.f32 -0.3333295, %v885_v59  ;;  %v347_v31 = vmul.f32 %v3292_v43, %v3292_v43  ;;  %v767_v21 = vsub.f32 2.0, %v752_v32 }
 0x14e   : > { %v914_v34 = vmul.f32 %v1725_v30, %v809_v15  ;;  %v361_v36 = vadd.f32 %v346_v49, %v3335_v58  ;;  %v781_v48 = vmul.f32 %v766_v42, %v736_v50  ;;  %vm4572_vm9 = vcmp.lt.s32.totalorder %v2289_v22, 127  ;;  %v1966_v3 = vpop.eup %1965  ;;  %v1986_v50 = vld [vmem:[%s2191_s20 + $0x60] sm:$0xff]  ;;  %v4575_v22 = vld [vmem:[#allocation42_spill] sm:$0xff] }
 0x14f   : > { %v187_v19 = vsel %vm4572_vm9, %v3244_v29, %v180_v7  ;;  %v915_v2 = vmul.f32 %v1726_v25, %v810_v26  ;;  %v616_v8 = vsel %vm4363_vm10, %v601_v44, %v3360_v5  ;;  %v782_v27 = vmul.f32 %v767_v21, %v737_v13  ;;  %vm4573_vm11 = vmmov %vm4572_vm9  ;;  %v1987_v13 = vld [vmem:[%s2191_s20 + $0x68] sm:$0xff]  ;;  %v4584_v21 = vld [vmem:[#allocation56_spill] sm:$0xff] }
 0x150   : > { %v186_v15 = vsel %vm4573_vm11, %v180_v7, %v3411_v56  ;;  %vm446_vm4 = vcmp.eq.f32.partialorder %v3462_v39, inf  ;;  %v929_v58 = vmul.f32 %v914_v34, %v3468_v16  ;;  %vm4574_vm5 = vcmp.gt.f32.partialorder %v3370_v45, %v3380_v55  ;;  %v4582_v42 = vld [vmem:[#allocation26_spill] sm:$0xff]  ;;  %v4585_v34 = vld [vmem:[#allocation17_spill] sm:$0xff] }
 0x151   : > { %v617_v29 = vsel %vm4574_vm5, %v602_v46, %v3370_v45  ;;  %v3564_v26 = vmul.f32 %v781_v48, %v616_v8  ;;  %v449_v49 = vand.u32 2147483648, %v3462_v39  ;;  %v930_v44 = vmul.f32 %v915_v2, %v3470_v9  ;;  %v4581_v46 = vld [vmem:[#allocation55_spill] sm:$0xff] }
 0x152   : > { %v3568_v14 = vmul.f32 %v782_v27, %v617_v29  ;;  %vm4576_vm6 = vnez %v4575_v22  ;;  %v944_v20 = vadd.f32 %v929_v58, %v3468_v16  ;;  %v362_v11 = vadd.f32 %v347_v31, %v3374_v47  ;;  %v4588_v8 = vld [vmem:[#allocation15_spill] sm:$0xff]  ;;  %v4589_v58 = vld [vmem:[#allocation16_spill] sm:$0xff] }
 0x153   : > { %v3573_v56 = vsel %vm4576_vm6, %v187_v19, %v1986_v50  ;;  %v3579_v12 = vmul.f32 %v3564_v26, %v3564_v26  ;;  %vm4578_vm2 = vnez %v4577_v18  ;;  %v440_v24 = vsel %vm439_vm14, %v3420_v54, %v438_v33 }
 0x154   : > { %v3584_v6 = vsel %vm4578_vm2, %v186_v15, %v1987_v13  ;;  %v945_v51 = vadd.f32 %v930_v44, %v3470_v9  ;;  %v3591_v16 = vadd.f32 1e-08, %v361_v36  ;;  %v812_v47 = vmul.f32 %v3568_v14, %v3568_v14  ;;  %v4586_v36 = vld [vmem:[#allocation23_spill] sm:$0xff] }
 0x155   : > { %v445_v28 = vmul.f32 %v1966_v3, %v3462_v39  ;;  %v959_v59 = vadd.f32 0.7853982, %v944_v20  ;;  %v826_v32 = vmul.f32 0.080537446, %v3579_v12  ;;  %v3599_v7 = vand.u32 2147483647, %v3573_v56 }
 0x156   : > { %v960_v30 = vadd.f32 0.7853982, %v945_v51  ;;  %vm989_vm14 = vcmp.gt.f32.partialorder %v4582_v42, %v4581_v46  ;;  %v827_v9 = vmul.f32 0.080537446, %v812_v47  ;;  %v3604_v33 = vand.u32 2147483647, %v3584_v6 }
 0x157   : > { %v443_v25 = vsel %vm441_vm8, %v442_v63, %v440_v24  ;;  %vm448_vm11 = vcmp.eq.f32.partialorder %v3462_v39, 0.0  ;;  %vm4583_vm5 = vcmp.gt.f32.partialorder %v3220_v62, %v3213_v17  ;;  %vm990_vm10 = vcmp.gt.f32.partialorder %v4585_v34, %v4584_v21 }
 0x158   : > { %v974_v31 = vsel %vm4583_vm5, %v959_v59, %v944_v20  ;;  %vm1079_vm3 = vcmp.lt.f32.partialorder %v4586_v36, 0.0  ;;  %v1712_v48 = vadd.f32 -0.13877685, %v826_v32  ;;  %vm4587_vm9 = vcmp.gt.f32.partialorder %v3231_v53, %v3226_v38 }
 0x159   : > { %v975_v19 = vsel %vm4587_vm9, %v960_v30, %v945_v51  ;;  %v1004_v3 = vsub.f32 1.5707964, %v974_v31  ;;  %vm1080_vm7 = vcmp.lt.f32.partialorder %v3162_v41, 0.0  ;;  %v3621_v54 = vadd.f32 1e-08, %v362_v11  ;;  %v1968_v15 = vpop.eup %1967 }
 0x15a   : > { %v1713_v63 = vadd.f32 -0.13877685, %v827_v9  ;;  %v447_v17 = vsel %vm446_vm4, %v3462_v39, %v445_v28  ;;  %v1005_v62 = vsub.f32 1.5707964, %v975_v19  ;;  %v856_v2 = vmul.f32 %v1712_v48, %v3579_v12 }
 0x15b   : > { %v3629_v27 = vmax.f32 %v4588_v8, %v3599_v7  ;;  %v1019_v38 = vsel %vm989_vm14, %v1004_v3, %v974_v31  ;;  %1969 = vrsqrt.f32 %v3591_v16  ;;  %v3637_v29 = vmax.f32 %v4589_v58, %v3604_v33 }
 0x15c   : > { %v857_v53 = vmul.f32 %v1713_v63, %v812_v47  ;;  %v1020_v44 = vsel %vm990_vm10, %v1005_v62, %v975_v19  ;;  %v1049_v50 = vsub.f32 3.1415927, %v1019_v38  ;;  %v871_v20 = vadd.f32 0.19977711, %v856_v2  ;;  %v4600_v2 = vld [vmem:[#allocation13_spill] sm:$0xff] }
 0x15d   : > { %v710_v11 = vmul.f32 %v1968_v15, %v3537_v52  ;;  %v1050_v13 = vsub.f32 3.1415927, %v1020_v44  ;;  %1971 = vrsqrt.f32 %v3621_v54  ;;  %v3646_v51 = vmin.f32 %v4588_v8, %v3599_v7 }
 0x15e   : > { %v872_v24 = vadd.f32 0.19977711, %v857_v53  ;;  %vm4590_vm8 = vcmp.lt.f32.partialorder %v4579_v10, 0.0  ;;  %v886_v59 = vmul.f32 %v871_v20, %v3579_v12  ;;  %v3652_v30 = vmul.f32 0.41421357, %v3629_v27 }
 0x15f   : > { %v1064_v28 = vsel %vm4590_vm8, %v1049_v50, %v1019_v38  ;;  %v725_v32 = vsub.f32 2.0, %v710_v11  ;;  %vm4591_vm10 = vcmp.lt.f32.partialorder %v4580_v4, 0.0  ;;  %v3657_v31 = vmul.f32 0.41421357, %v3637_v29 }
 0x160   : > { %v1065_v46 = vsel %vm4591_vm10, %v1050_v13, %v1020_v44  ;;  %v1094_v42 = vsub.f32 0.0, %v1064_v28  ;;  %v887_v9 = vmul.f32 %v872_v24, %v812_v47  ;;  %v1727_v34 = vadd.f32 -0.3333295, %v886_v59  ;;  %v4595_v24 = vld [vmem:[#allocation62_spill] sm:$0xff]  ;;  %v4603_v44 = vld [vmem:[#allocation19_spill] sm:$0xff] }
 0x161   : > { %v1095_v21 = vsub.f32 0.0, %v1065_v46  ;;  %v740_v10 = vmul.f32 %v1968_v15, %v725_v32  ;;  %v3661_v48 = vmin.f32 %v4589_v58, %v3604_v33  ;;  %v450_v4 = vsel %vm448_vm11, %v449_v49, %v447_v17 }
 0x162   : > { %v1109_v19 = vsel %vm1079_vm3, %v1094_v42, %v1064_v28  ;;  %v1728_v3 = vadd.f32 -0.3333295, %v887_v9  ;;  %v605_v63 = vsub.f32 %v3478_v57, %v3474_v40  ;;  %v916_v38 = vmul.f32 %v1727_v34, %v3579_v12 }
 0x163   : > { %v1110_v62 = vsel %vm1080_vm7, %v1095_v21, %v1065_v46  ;;  %v1124_v15 = vsel %vm2533_vm13, %v443_v25, %v1109_v19  ;;  %v755_v53 = vmul.f32 %v740_v10, %v3537_v52  ;;  %vm588_vm3 = vcmp.gt.f32.partialorder %v3646_v51, %v3652_v30  ;;  %v4611_v30 = vld [vmem:[#allocation10_spill] sm:$0xff] }
 0x164   : > { %v1125_v39 = vsel %vm2542_vm15, %v450_v4, %v1110_v62  ;;  %1139 = vst [vmem:[%s3066_s25 + $0x40] sm:$0xff] %v1124_v15  ;;  %v917_v49 = vmul.f32 %v1728_v3, %v812_v47  ;;  %vm589_vm4 = vcmp.gt.f32.partialorder %v3661_v48, %v3657_v31  ;;  %v931_v41 = vmul.f32 %v916_v38, %v3564_v26  ;;  %v4597_v4 = vld [vmem:[#allocation57_spill] sm:$0xff]  ;;  %v4601_v15 = vld [vmem:[#allocation58_spill] sm:$0xff] }
 0x165   : > { %1140 = vst [vmem:[%s3066_s25 + $0x48] sm:$0xff] %v1125_v39  ;;  %v770_v40 = vsub.f32 2.0, %v755_v53  ;;  %v633_v12 = vadd.f32 %v3646_v51, %v3629_v27  ;;  %v634_v52 = vadd.f32 %v3661_v48, %v3637_v29  ;;  %v350_v47 = vmul.f32 %v3433_v0, %v3433_v0  ;;  %v4599_v62 = vld [vmem:[#allocation25_spill] sm:$0xff] }
 0x166   : > { %v932_v25 = vmul.f32 %v917_v49, %v3568_v14  ;;  %v946_v36 = vadd.f32 %v931_v41, %v3564_v26  ;;  %vm4594_vm13 = vcmp.gt.f32.partialorder %v3478_v57, %v3502_v61  ;;  %v335_v28 = vmul.f32 %v4595_v24, %v4595_v24  ;;  %v4602_v53 = vld [vmem:[#allocation9_spill] sm:$0xff] }
 0x167   : > { %v785_v17 = vmul.f32 %v770_v40, %v740_v10  ;;  %v648_v50 = vsel %vm588_vm3, %v633_v12, %v3629_v27  ;;  %v649_v20 = vsel %vm589_vm4, %v634_v52, %v3637_v29  ;;  %v620_v13 = vsel %vm4594_vm13, %v605_v63, %v3478_v57 }
 0x168   : > { %v947_v11 = vadd.f32 %v932_v25, %v3568_v14  ;;  %vm663_vm15 = vcmp.eq.f32.partialorder %v648_v50, 0.0  ;;  %v1970_v26 = vpop.eup %1969  ;;  %v961_v59 = vadd.f32 0.7853982, %v946_v36  ;;  %vm664_vm7 = vcmp.eq.f32.partialorder %v649_v20, 0.0 }
 0x169   : > { %v800_v32 = vmul.f32 %v785_v17, %v620_v13  ;;  %v3709_v42 = vsel %vm663_vm15, 1.0, %v648_v50  ;;  %v3711_v9 = vsel %vm664_vm7, 1.0, %v649_v20  ;;  %vm4596_vm9 = vcmp.gt.f32.partialorder %v3360_v5, %v3377_v23 }
 0x16a   : > { %v962_v46 = vadd.f32 0.7853982, %v947_v11  ;;  %v1972_v21 = vpop.eup %1971  ;;  %v976_v14 = vsel %vm4596_vm9, %v961_v59, %v946_v36  ;;  %v365_v34 = vadd.f32 %v350_v47, %v335_v28  ;;  %1973 = vrcp.f32 %v3709_v42 }
 0x16b   : > { %v815_v10 = vmul.f32 %v800_v32, %v800_v32  ;;  %vm1036_vm14 = vcmp.lt.f32.partialorder %v4597_v4, 0.0  ;;  %vm4598_vm11 = vcmp.gt.f32.partialorder %v3370_v45, %v3380_v55  ;;  %v1006_v3 = vsub.f32 1.5707964, %v976_v14 }
 0x16c   : > { %v977_v19 = vsel %vm4598_vm11, %v962_v46, %v947_v11  ;;  %1975 = vrcp.f32 %v3711_v9  ;;  %v452_v63 = vmul.f32 %v1970_v26, %v3591_v16  ;;  %vm991_vm5 = vcmp.gt.f32.partialorder %v4600_v2, %v4599_v62 }
 0x16d   : > { %v1007_v23 = vsub.f32 1.5707964, %v977_v19  ;;  %v830_v5 = vmul.f32 0.080537446, %v815_v10  ;;  %vm1037_vm8 = vcmp.lt.f32.partialorder %v4601_v15, 0.0  ;;  %v459_v38 = vmul.f32 %v1972_v21, %v3621_v54 }
 0x16e   : > { %vm992_vm10 = vcmp.gt.f32.partialorder %v4603_v44, %v4602_v53  ;;  %v1021_v39 = vsel %vm991_vm5, %v1006_v3, %v976_v14  ;;  %v3729_v49 = vadd.f32 1e-08, %v365_v34  ;;  %vm453_vm13 = vcmp.eq.f32.partialorder %v3591_v16, inf }
 0x16f   : > { %v1022_v55 = vsel %vm992_vm10, %v1007_v23, %v977_v19  ;;  %v1051_v45 = vsub.f32 3.1415927, %v1021_v39  ;;  %v1716_v41 = vadd.f32 -0.13877685, %v830_v5  ;;  %vm455_vm15 = vcmp.eq.f32.partialorder %v3591_v16, 0.0 }
 0x170   : > { %v1052_v40 = vsub.f32 3.1415927, %v1022_v55  ;;  %vm1081_vm7 = vcmp.lt.f32.partialorder %v3287_v35, 0.0  ;;  %v454_v12 = vsel %vm453_vm13, %v3591_v16, %v452_v63  ;;  %vm460_vm9 = vcmp.eq.f32.partialorder %v3621_v54, inf }
 0x171   : > { %v1066_v52 = vsel %vm1036_vm14, %v1051_v45, %v1021_v39  ;;  %v860_v25 = vmul.f32 %v1716_v41, %v815_v10  ;;  %v456_v47 = vand.u32 2147483648, %v3591_v16  ;;  %v461_v36 = vsel %vm460_vm9, %v3621_v54, %v459_v38 }
 0x172   : > { %v1067_v17 = vsel %vm1037_vm8, %v1052_v40, %v1022_v55  ;;  %v1096_v50 = vsub.f32 0.0, %v1066_v52  ;;  %v463_v20 = vand.u32 2147483648, %v3621_v54  ;;  %1977 = vrsqrt.f32 %v3729_v49 }
 0x173   : > { %v1097_v11 = vsub.f32 0.0, %v1067_v17  ;;  %v875_v13 = vadd.f32 0.19977711, %v860_v25  ;;  %v457_v26 = vsel %vm455_vm15, %v456_v47, %v454_v12  ;;  %vm462_vm14 = vcmp.eq.f32.partialorder %v3621_v54, 0.0 }
 0x174   : > { %vm1082_vm11 = vcmp.lt.f32.partialorder %v3292_v43, 0.0  ;;  %v1111_v16 = vsel %vm1081_vm7, %v1096_v50, %v1066_v52  ;;  %v464_v24 = vsel %vm462_vm14, %v463_v20, %v461_v36  ;;  %v603_v39 = vsub.f32 %v3646_v51, %v3629_v27  ;;  %v4607_v52 = vld [vmem:[#allocation60_spill] sm:$0xff]  ;;  %v4608_v36 = vld [vmem:[#allocation61_spill] sm:$0xff]  ;;  %v4609_v50 = vld [vmem:[#allocation3_spill] sm:$0xff] }
 0x175   : > { %v1112_v28 = vsel %vm1082_vm11, %v1097_v11, %v1067_v17  ;;  %v1126_v46 = vsel %vm2582_vm0, %v457_v26, %v1111_v16  ;;  %v890_v21 = vmul.f32 %v875_v13, %v815_v10  ;;  %vm4606_vm0 = vcmp.gt.f32.partialorder %v3478_v57, %v3502_v61 }
 0x176   : > { %v1127_v34 = vsel %vm2586_vm12, %v464_v24, %v1112_v28  ;;  %1141 = vst [vmem:[%s3066_s25 + $0x50] sm:$0xff] %v1126_v46  ;;  %v604_v45 = vsub.f32 %v3661_v48, %v3637_v29  ;;  %vm995_vm12 = vcmp.gt.f32.partialorder %v3445_v37, %v3356_v60  ;;  %v348_v27 = vmul.f32 %v3573_v56, %v3573_v56 }
 0x177   : > { %1142 = vst [vmem:[%s3066_s25 + $0x58] sm:$0xff] %v1127_v34  ;;  %v1731_v4 = vadd.f32 -0.3333295, %v890_v21  ;;  %v1974_v19 = vpop.eup %1973  ;;  %v349_v57 = vmul.f32 %v3584_v6, %v3584_v6  ;;  %v618_v61 = vsel %vm588_vm3, %v603_v39, %v3646_v51  ;;  %v333_v25 = vmul.f32 %v4607_v52, %v4607_v52 }
 0x178   : > { %v708_v43 = vmul.f32 %v1974_v19, %v3709_v42  ;;  %v619_v60 = vsel %vm589_vm4, %v604_v45, %v3661_v48  ;;  %v334_v17 = vmul.f32 %v4608_v36, %v4608_v36  ;;  %vm1040_vm5 = vcmp.lt.f32.partialorder %v4609_v50, 0.0 }
 0x179   : > { %v1976_v3 = vpop.eup %1975  ;;  %v920_v54 = vmul.f32 %v1731_v4, %v815_v10  ;;  %vm481_vm8 = vcmp.eq.f32.partialorder %v3729_v49, inf  ;;  %v363_v26 = vadd.f32 %v348_v27, %v333_v25  ;;  %v484_v24 = vand.u32 2147483648, %v3729_v49  ;;  %v4610_v25 = vld [vmem:[#allocation18_spill] sm:$0xff] }
 0x17a   : > { %v709_v35 = vmul.f32 %v1976_v3, %v3711_v9  ;;  %v723_v62 = vsub.f32 2.0, %v708_v43  ;;  %v364_v59 = vadd.f32 %v349_v57, %v334_v17  ;;  %vm483_vm10 = vcmp.eq.f32.partialorder %v3729_v49, 0.0 }
 0x17b   : > { %v935_v63 = vmul.f32 %v920_v54, %v800_v32  ;;  %vm1085_vm13 = vcmp.lt.f32.partialorder %v3433_v0, 0.0  ;;  %vm994_vm15 = vcmp.gt.f32.partialorder %v3604_v33, %v4589_v58  ;;  %vm1038_vm7 = vcmp.lt.f32.partialorder %v4610_v25, 0.0 }
 0x17c   : > { %v724_v2 = vsub.f32 2.0, %v709_v35  ;;  %v738_v5 = vmul.f32 %v1974_v19, %v723_v62  ;;  %v379_v43 = vadd.f32 1e-08, %v364_v59  ;;  %vm1039_vm9 = vcmp.lt.f32.partialorder %v4611_v30, 0.0 }
 0x17d   : > { %v950_v23 = vadd.f32 %v935_v63, %v800_v32  ;;  %vm1083_vm11 = vcmp.lt.f32.partialorder %v3573_v56, 0.0 }
 0x17e   : > { %v739_v15 = vmul.f32 %v1976_v3, %v724_v2  ;;  %v753_v53 = vmul.f32 %v738_v5, %v3709_v42  ;;  %v378_v3 = vadd.f32 1e-08, %v363_v26  ;;  %v477_v33 = vand.u32 2147483648, %v379_v43 }
 0x17f   : > { %v965_v38 = vadd.f32 0.7853982, %v950_v23  ;;  %v1978_v44 = vpop.eup %1977 }
 0x180   : > { %v754_v55 = vmul.f32 %v739_v15, %v3711_v9  ;;  %v768_v41 = vsub.f32 2.0, %v753_v53  ;;  %v480_v12 = vmul.f32 %v1978_v44, %v3729_v49  ;;  %1979 = vrsqrt.f32 %v378_v3 }
 0x181   : > { %v980_v10 = vsel %vm4606_vm0, %v965_v38, %v950_v23  ;;  %1981 = vrsqrt.f32 %v379_v43  ;;  %vm469_vm14 = vcmp.eq.f32.partialorder %v378_v3, 0.0  ;;  %vm476_vm0 = vcmp.eq.f32.partialorder %v379_v43, 0.0 }
 0x182   : > { %v1010_v32 = vsub.f32 1.5707964, %v980_v10  ;;  %v769_v40 = vsub.f32 2.0, %v754_v55  ;;  %v783_v42 = vmul.f32 %v768_v41, %v738_v5  ;;  %v482_v11 = vsel %vm481_vm8, %v3729_v49, %v480_v12 }
 0x183   : > { %v485_v14 = vsel %vm483_vm10, %v484_v24, %v482_v11 }
 0x184   : > { %v1025_v9 = vsel %vm995_vm12, %v1010_v32, %v980_v10  ;;  %v784_v29 = vmul.f32 %v769_v40, %v739_v15  ;;  %v798_v37 = vmul.f32 %v783_v42, %v618_v61  ;;  %vm1084_vm12 = vcmp.lt.f32.partialorder %v3584_v6, 0.0 }
 0x185   : > { %v1055_v47 = vsub.f32 3.1415927, %v1025_v9 }
 0x186   : > { %v799_v20 = vmul.f32 %v784_v29, %v619_v60  ;;  %v813_v16 = vmul.f32 %v798_v37, %v798_v37 }
 0x187   : > { %v1070_v13 = vsel %vm1040_vm5, %v1055_v47, %v1025_v9  ;;  %v470_v47 = vand.u32 2147483648, %v378_v3 }
 0x188   : > { %v1100_v28 = vsub.f32 0.0, %v1070_v13  ;;  %v814_v46 = vmul.f32 %v799_v20, %v799_v20  ;;  %v828_v21 = vmul.f32 0.080537446, %v813_v16 }
 0x18a   : > { %v1115_v34 = vsel %vm1085_vm13, %v1100_v28, %v1070_v13  ;;  %v829_v4 = vmul.f32 0.080537446, %v814_v46  ;;  %v1714_v54 = vadd.f32 -0.13877685, %v828_v21 }
 0x18b   : > { %v1130_v19 = vsel %vm4566_vm1, %v485_v14, %v1115_v34  ;;  %vm993_vm1 = vcmp.gt.f32.partialorder %v3599_v7, %v4588_v8 }
 0x18c   : > { %1145 = vst [vmem:[%s3066_s25 + $0x70] sm:$0xff] %v1130_v19  ;;  %v1715_v35 = vadd.f32 -0.13877685, %v829_v4  ;;  %v858_v63 = vmul.f32 %v1714_v54, %v813_v16 }
 0x18d   : > { %v1980_v45 = vpop.eup %1979 }
 0x18e   : > { %v859_v62 = vmul.f32 %v1715_v35, %v814_v46  ;;  %v873_v2 = vadd.f32 0.19977711, %v858_v63  ;;  %v1982_v32 = vpop.eup %1981  ;;  %v466_v42 = vmul.f32 %v1980_v45, %v378_v3 }
 0x18f   : > { %v473_v57 = vmul.f32 %v1982_v32, %v379_v43 }
 0x190   : > { %v874_v49 = vadd.f32 0.19977711, %v859_v62  ;;  %v888_v23 = vmul.f32 %v873_v2, %v813_v16 }
 0x192   : > { %v889_v0 = vmul.f32 %v874_v49, %v814_v46  ;;  %v1729_v5 = vadd.f32 -0.3333295, %v888_v23 }
 0x194   : > { %v1730_v15 = vadd.f32 -0.3333295, %v889_v0  ;;  %v918_v38 = vmul.f32 %v1729_v5, %v813_v16 }
 0x196   : > { %v919_v53 = vmul.f32 %v1730_v15, %v814_v46  ;;  %v933_v44 = vmul.f32 %v918_v38, %v798_v37 }
 0x198   : > { %v934_v1 = vmul.f32 %v919_v53, %v799_v20  ;;  %v948_v39 = vadd.f32 %v933_v44, %v798_v37 }
 0x19a   : > { %v949_v55 = vadd.f32 %v934_v1, %v799_v20  ;;  %v963_v10 = vadd.f32 0.7853982, %v948_v39 }
 0x19c   : > { %v964_v41 = vadd.f32 0.7853982, %v949_v55  ;;  %v978_v40 = vsel %vm588_vm3, %v963_v10, %v948_v39  ;;  %vm467_vm3 = vcmp.eq.f32.partialorder %v378_v3, inf }
 0x19d   : > { %v1008_v27 = vsub.f32 1.5707964, %v978_v40  ;;  %v468_v31 = vsel %vm467_vm3, %v378_v3, %v466_v42 }
 0x19e   : > { %v979_v12 = vsel %vm589_vm4, %v964_v41, %v949_v55  ;;  %vm474_vm4 = vcmp.eq.f32.partialorder %v379_v43, inf  ;;  %v471_v37 = vsel %vm469_vm14, %v470_v47, %v468_v31 }
 0x19f   : > { %v1009_v9 = vsub.f32 1.5707964, %v979_v12  ;;  %v1023_v61 = vsel %vm993_vm1, %v1008_v27, %v978_v40  ;;  %v475_v7 = vsel %vm474_vm4, %v379_v43, %v473_v57 }
 0x1a0   : > { %v1053_v52 = vsub.f32 3.1415927, %v1023_v61  ;;  %v478_v17 = vsel %vm476_vm0, %v477_v33, %v475_v7 }
 0x1a1   : > { %v1024_v29 = vsel %vm994_vm15, %v1009_v9, %v979_v12 }
 0x1a2   : > { %v1054_v51 = vsub.f32 3.1415927, %v1024_v29  ;;  %v1068_v48 = vsel %vm1038_vm7, %v1053_v52, %v1023_v61 }
 0x1a3   : > { %v1098_v60 = vsub.f32 0.0, %v1068_v48 }
 0x1a4   : > { %v1069_v8 = vsel %vm1039_vm9, %v1054_v51, %v1024_v29 }
 0x1a5   : > { %v1099_v58 = vsub.f32 0.0, %v1069_v8  ;;  %v1113_v36 = vsel %vm1083_vm11, %v1098_v60, %v1068_v48  ;;  %1152 = sbr.rel (!%p2179_p4) target bundleno = 572 (0x23c), region = 28 }
 0x1a6   : > { %v1128_v20 = vsel %vm4576_vm6, %v471_v37, %v1113_v36 }
 0x1a7   : > { %v1114_v50 = vsel %vm1084_vm12, %v1099_v58, %v1069_v8  ;;  %1143 = vst [vmem:[%s3066_s25 + $0x60] sm:$0xff] %v1128_v20 }
 0x1a8   : > { %v1129_v11 = vsel %vm4578_vm2, %v478_v17, %v1114_v50 }
 0x1a9   : > { %1144 = vst [vmem:[%s3066_s25 + $0x68] sm:$0xff] %v1129_v11 }
 0x1aa   : > { %s4626_s26 = smov (!%p1155_p8, %s1154_s26), 15 }
 0x1ab   : > { %s1732_s2 = sshll.u32 %s4626_s26, 7  ;;  %s3822_s3 = sshll.u32 %s4626_s26, 3 }
 0x1ac   : > { %p1736_p9 = scmp.eq.s32.totalorder %s1732_s2, 0 }
 0x1ad   : > { %p1165_p10 = scmp.lt.u32.totalorder (!%p1736_p9), %s3822_s3, 8 }
 0x1ae   : > { %1164 = sbr.rel (%p1736_p9) target bundleno = 572 (0x23c), region = 32 }
 0x1b3   : > { %1168 = sbr.rel (%p1165_p10) target bundleno = 563 (0x233), region = 36  ;;  %s3826_s4 = sand.u32 (!%p1165_p10), 7, %s3822_s3  }
 0x1b4   : > { %p1185_p11 = scmp.eq.s32.totalorder (!%p1165_p10), %s3826_s4, 0  ;;  %p1737_p12 = scmp.ne.s32.totalorder (!%p1165_p10), %s3826_s4, 0 }
 0x1b8   : > { %1188 = sbr.rel (%p1737_p12) target bundleno = 499 (0x1f3), region = 51  ;;  %s1189_s5 = sshrl.u32 (!%p1737_p12), %s3822_s3, 3 }
 0x1b9   : > { %s3833_s6 = sshrl.u32 (!%p1737_p12), %s1189_s5, 6 }
 0x1ba   : > { %p1738_p13 = scmp.le.s32.totalorder (!%p1737_p12), %s3833_s6, 0 }
 0x1bd   : > { %1625 = sbr.rel (%p1738_p13) target bundleno = 483 (0x1e3), region = 132  ;;  %s4612_s8 = smov (!%p1738_p13), %s3820_s30 }
 0x1be   : > { %s4613_s9 = smov (!%p1738_p13), %s3066_s25  ;;  %s3842_s11 = smov (!%p1738_p13), 0  }
 0x1bf   : > { %s3844_s12 = smov (!%p1738_p13), 0  }
 0x1c2 LB: >> { %v1202_v22 = vld [vmem:[%s2082_s9] sm:$0xff]  ;;  %v1204_v56 = vld [vmem:[%s2082_s9 + $0x8] sm:$0xff]  ;;  %v1206_v18 = vld [vmem:[%s2082_s9 + $0x10] sm:$0xff]  ;;  %s1330_s14 = sadd.s32 1, %s2086_s11  ;;  %s1196_s12 = sadd.s32 1, %s2090_s12   ;;  %s2090_s12 = sphi %s3844_s12, %s1196_s12   ;;  %s2086_s11 = sphi %s3842_s11, %s4616_s11   ;;  %s2082_s9 = sphi %s4613_s9, %s4615_s9   ;;  %s2078_s8 = sphi %s4612_s8, %s4614_s8  }
 0x1c3   : >> { %1203 = vst [vmem:[%s2078_s8] sm:$0xff] %v1202_v22  ;;  %1205 = vst [vmem:[%s2078_s8 + $0x8] sm:$0xff] %v1204_v56  ;;  %v1208_v6 = vld [vmem:[%s2082_s9 + $0x18] sm:$0xff]  ;;  %v1210_v13 = vld [vmem:[%s2082_s9 + $0x20] sm:$0xff]  ;;  %p1331_p0 = scmp.ge.s32.totalorder %s1330_s14, %s3833_s6  ;;  %p1195_p1 = scmp.ge.s32.totalorder %s1196_s12, %s3833_s6 }
 0x1c4   : >> { %1207 = vst [vmem:[%s2078_s8 + $0x10] sm:$0xff] %v1206_v18  ;;  %v1212_v26 = vld [vmem:[%s2082_s9 + $0x28] sm:$0xff]  ;;  %1209 = vst [vmem:[%s2078_s8 + $0x18] sm:$0xff] %v1208_v6  ;;  %v1214_v16 = vld [vmem:[%s2082_s9 + $0x30] sm:$0xff] }
 0x1c5   : >> { %1211 = vst [vmem:[%s2078_s8 + $0x20] sm:$0xff] %v1210_v13  ;;  %1213 = vst [vmem:[%s2078_s8 + $0x28] sm:$0xff] %v1212_v26  ;;  %v1216_v24 = vld [vmem:[%s2082_s9 + $0x38] sm:$0xff]  ;;  %v1218_v28 = vld [vmem:[%s2082_s9 + $0x40] sm:$0xff]  ;;  %s4628_s14 = smov (%p1331_p0, %s1330_s14), 0 }
 0x1c6   : >> { %1215 = vst [vmem:[%s2078_s8 + $0x30] sm:$0xff] %v1214_v16  ;;  %1217 = vst [vmem:[%s2078_s8 + $0x38] sm:$0xff] %v1216_v24  ;;  %v1220_v59 = vld [vmem:[%s2082_s9 + $0x48] sm:$0xff]  ;;  %v1222_v46 = vld [vmem:[%s2082_s9 + $0x50] sm:$0xff]  ;;  %s1739_s15 = sshll.u32 %s4628_s14, 9  ;;  %s4616_s11 = smov %s4628_s14 }
 0x1c7   : >> { %1219 = vst [vmem:[%s2078_s8 + $0x40] sm:$0xff] %v1218_v28  ;;  %v1224_v21 = vld [vmem:[%s2082_s9 + $0x58] sm:$0xff]  ;;  %1221 = vst [vmem:[%s2078_s8 + $0x48] sm:$0xff] %v1220_v59  ;;  %v1226_v14 = vld [vmem:[%s2082_s9 + $0x60] sm:$0xff]  ;;  %s3900_s16 = scalar_lea.vmem %s3066_s25, %s1739_s15 [#allocation2]   ;;  %s3903_s17 = scalar_lea.vmem %s3820_s30, %s1739_s15  }
 0x1c8   : >> { %1223 = vst [vmem:[%s2078_s8 + $0x50] sm:$0xff] %v1222_v46  ;;  %1225 = vst [vmem:[%s2078_s8 + $0x58] sm:$0xff] %v1224_v21  ;;  %v1228_v34 = vld [vmem:[%s2082_s9 + $0x68] sm:$0xff]  ;;  %v1230_v4 = vld [vmem:[%s2082_s9 + $0x70] sm:$0xff] }
 0x1c9   : >> { %1227 = vst [vmem:[%s2078_s8 + $0x60] sm:$0xff] %v1226_v14  ;;  %1229 = vst [vmem:[%s2078_s8 + $0x68] sm:$0xff] %v1228_v34  ;;  %v1232_v19 = vld [vmem:[%s2082_s9 + $0x78] sm:$0xff]  ;;  %v1234_v3 = vld [vmem:[%s2082_s9 + $0x80] sm:$0xff] }
 0x1ca   : >> { %1231 = vst [vmem:[%s2078_s8 + $0x70] sm:$0xff] %v1230_v4  ;;  %v1236_v54 = vld [vmem:[%s2082_s9 + $0x88] sm:$0xff]  ;;  %1233 = vst [vmem:[%s2078_s8 + $0x78] sm:$0xff] %v1232_v19  ;;  %v1238_v43 = vld [vmem:[%s2082_s9 + $0x90] sm:$0xff] }
 0x1cb   : >> { %1235 = vst [vmem:[%s2078_s8 + $0x80] sm:$0xff] %v1234_v3  ;;  %1237 = vst [vmem:[%s2078_s8 + $0x88] sm:$0xff] %v1236_v54  ;;  %v1240_v35 = vld [vmem:[%s2082_s9 + $0x98] sm:$0xff]  ;;  %v1242_v63 = vld [vmem:[%s2082_s9 + $0xa0] sm:$0xff] }
 0x1cc   : >> { %1239 = vst [vmem:[%s2078_s8 + $0x90] sm:$0xff] %v1238_v43  ;;  %1241 = vst [vmem:[%s2078_s8 + $0x98] sm:$0xff] %v1240_v35  ;;  %v1244_v62 = vld [vmem:[%s2082_s9 + $0xa8] sm:$0xff]  ;;  %v1246_v2 = vld [vmem:[%s2082_s9 + $0xb0] sm:$0xff] }
 0x1cd   : >> { %1243 = vst [vmem:[%s2078_s8 + $0xa0] sm:$0xff] %v1242_v63  ;;  %v1248_v49 = vld [vmem:[%s2082_s9 + $0xb8] sm:$0xff]  ;;  %1245 = vst [vmem:[%s2078_s8 + $0xa8] sm:$0xff] %v1244_v62  ;;  %v1250_v23 = vld [vmem:[%s2082_s9 + $0xc0] sm:$0xff] }
 0x1ce   : >> { %1247 = vst [vmem:[%s2078_s8 + $0xb0] sm:$0xff] %v1246_v2  ;;  %1249 = vst [vmem:[%s2078_s8 + $0xb8] sm:$0xff] %v1248_v49  ;;  %v1252_v0 = vld [vmem:[%s2082_s9 + $0xc8] sm:$0xff]  ;;  %v1254_v5 = vld [vmem:[%s2082_s9 + $0xd0] sm:$0xff] }
 0x1cf   : >> { %1251 = vst [vmem:[%s2078_s8 + $0xc0] sm:$0xff] %v1250_v23  ;;  %1253 = vst [vmem:[%s2078_s8 + $0xc8] sm:$0xff] %v1252_v0  ;;  %v1256_v15 = vld [vmem:[%s2082_s9 + $0xd8] sm:$0xff]  ;;  %v1258_v38 = vld [vmem:[%s2082_s9 + $0xe0] sm:$0xff] }
 0x1d0   : >> { %1255 = vst [vmem:[%s2078_s8 + $0xd0] sm:$0xff] %v1254_v5  ;;  %v1260_v53 = vld [vmem:[%s2082_s9 + $0xe8] sm:$0xff]  ;;  %1257 = vst [vmem:[%s2078_s8 + $0xd8] sm:$0xff] %v1256_v15  ;;  %v1262_v44 = vld [vmem:[%s2082_s9 + $0xf0] sm:$0xff] }
 0x1d1   : >> { %1259 = vst [vmem:[%s2078_s8 + $0xe0] sm:$0xff] %v1258_v38  ;;  %1261 = vst [vmem:[%s2078_s8 + $0xe8] sm:$0xff] %v1260_v53  ;;  %v1264_v1 = vld [vmem:[%s2082_s9 + $0xf8] sm:$0xff]  ;;  %v1266_v39 = vld [vmem:[%s2082_s9 + $0x100] sm:$0xff] }
 0x1d2   : >> { %1263 = vst [vmem:[%s2078_s8 + $0xf0] sm:$0xff] %v1262_v44  ;;  %1265 = vst [vmem:[%s2078_s8 + $0xf8] sm:$0xff] %v1264_v1  ;;  %v1268_v55 = vld [vmem:[%s2082_s9 + $0x108] sm:$0xff]  ;;  %v1270_v10 = vld [vmem:[%s2082_s9 + $0x110] sm:$0xff] }
 0x1d3   : >> { %1267 = vst [vmem:[%s2078_s8 + $0x100] sm:$0xff] %v1266_v39  ;;  %v1272_v45 = vld [vmem:[%s2082_s9 + $0x118] sm:$0xff]  ;;  %1269 = vst [vmem:[%s2078_s8 + $0x108] sm:$0xff] %v1268_v55  ;;  %v1274_v41 = vld [vmem:[%s2082_s9 + $0x120] sm:$0xff] }
 0x1d4   : >> { %1271 = vst [vmem:[%s2078_s8 + $0x110] sm:$0xff] %v1270_v10  ;;  %1273 = vst [vmem:[%s2078_s8 + $0x118] sm:$0xff] %v1272_v45  ;;  %v1276_v32 = vld [vmem:[%s2082_s9 + $0x128] sm:$0xff]  ;;  %v1278_v40 = vld [vmem:[%s2082_s9 + $0x130] sm:$0xff] }
 0x1d5   : >> { %1275 = vst [vmem:[%s2078_s8 + $0x120] sm:$0xff] %v1274_v41  ;;  %1277 = vst [vmem:[%s2078_s8 + $0x128] sm:$0xff] %v1276_v32  ;;  %v1280_v12 = vld [vmem:[%s2082_s9 + $0x138] sm:$0xff]  ;;  %v1282_v27 = vld [vmem:[%s2082_s9 + $0x140] sm:$0xff] }
 0x1d6   : >> { %1279 = vst [vmem:[%s2078_s8 + $0x130] sm:$0xff] %v1278_v40  ;;  %v1284_v42 = vld [vmem:[%s2082_s9 + $0x148] sm:$0xff]  ;;  %1281 = vst [vmem:[%s2078_s8 + $0x138] sm:$0xff] %v1280_v12  ;;  %v1286_v9 = vld [vmem:[%s2082_s9 + $0x150] sm:$0xff] }
 0x1d7   : >> { %1283 = vst [vmem:[%s2078_s8 + $0x140] sm:$0xff] %v1282_v27  ;;  %1285 = vst [vmem:[%s2078_s8 + $0x148] sm:$0xff] %v1284_v42  ;;  %v1288_v57 = vld [vmem:[%s2082_s9 + $0x158] sm:$0xff]  ;;  %v1290_v61 = vld [vmem:[%s2082_s9 + $0x160] sm:$0xff] }
 0x1d8   : >> { %1287 = vst [vmem:[%s2078_s8 + $0x150] sm:$0xff] %v1286_v9  ;;  %1289 = vst [vmem:[%s2078_s8 + $0x158] sm:$0xff] %v1288_v57  ;;  %v1292_v29 = vld [vmem:[%s2082_s9 + $0x168] sm:$0xff]  ;;  %v1294_v52 = vld [vmem:[%s2082_s9 + $0x170] sm:$0xff] }
 0x1d9   : >> { %1291 = vst [vmem:[%s2078_s8 + $0x160] sm:$0xff] %v1290_v61  ;;  %v1296_v25 = vld [vmem:[%s2082_s9 + $0x178] sm:$0xff]  ;;  %1293 = vst [vmem:[%s2078_s8 + $0x168] sm:$0xff] %v1292_v29  ;;  %v1298_v51 = vld [vmem:[%s2082_s9 + $0x180] sm:$0xff] }
 0x1da   : >> { %1295 = vst [vmem:[%s2078_s8 + $0x170] sm:$0xff] %v1294_v52  ;;  %1297 = vst [vmem:[%s2078_s8 + $0x178] sm:$0xff] %v1296_v25  ;;  %v1300_v30 = vld [vmem:[%s2082_s9 + $0x188] sm:$0xff]  ;;  %v1302_v31 = vld [vmem:[%s2082_s9 + $0x190] sm:$0xff] }
 0x1db   : >> { %1299 = vst [vmem:[%s2078_s8 + $0x180] sm:$0xff] %v1298_v51  ;;  %1301 = vst [vmem:[%s2078_s8 + $0x188] sm:$0xff] %v1300_v30  ;;  %v1304_v48 = vld [vmem:[%s2082_s9 + $0x198] sm:$0xff]  ;;  %v1306_v47 = vld [vmem:[%s2082_s9 + $0x1a0] sm:$0xff] }
 0x1dc   : >> { %1303 = vst [vmem:[%s2078_s8 + $0x190] sm:$0xff] %v1302_v31  ;;  %v1308_v7 = vld [vmem:[%s2082_s9 + $0x1a8] sm:$0xff]  ;;  %1305 = vst [vmem:[%s2078_s8 + $0x198] sm:$0xff] %v1304_v48  ;;  %v1310_v8 = vld [vmem:[%s2082_s9 + $0x1b0] sm:$0xff] }
 0x1dd   : >> { %1307 = vst [vmem:[%s2078_s8 + $0x1a0] sm:$0xff] %v1306_v47  ;;  %1309 = vst [vmem:[%s2078_s8 + $0x1a8] sm:$0xff] %v1308_v7  ;;  %v1312_v60 = vld [vmem:[%s2082_s9 + $0x1b8] sm:$0xff]  ;;  %v1314_v33 = vld [vmem:[%s2082_s9 + $0x1c0] sm:$0xff] }
 0x1de   : >> { %1311 = vst [vmem:[%s2078_s8 + $0x1b0] sm:$0xff] %v1310_v8  ;;  %1313 = vst [vmem:[%s2078_s8 + $0x1b8] sm:$0xff] %v1312_v60  ;;  %v1316_v58 = vld [vmem:[%s2082_s9 + $0x1c8] sm:$0xff]  ;;  %v1318_v37 = vld [vmem:[%s2082_s9 + $0x1d0] sm:$0xff]  ;;  %1198 = sbr.rel (!%p1195_p1) target bundleno = 450 (0x1c2), region = 138 }
 0x1df   : >> { %1315 = vst [vmem:[%s2078_s8 + $0x1c0] sm:$0xff] %v1314_v33  ;;  %v1320_v36 = vld [vmem:[%s2082_s9 + $0x1d8] sm:$0xff]  ;;  %1317 = vst [vmem:[%s2078_s8 + $0x1c8] sm:$0xff] %v1316_v58  ;;  %v1322_v17 = vld [vmem:[%s2082_s9 + $0x1e0] sm:$0xff] }
 0x1e0   : >> { %1319 = vst [vmem:[%s2078_s8 + $0x1d0] sm:$0xff] %v1318_v37  ;;  %1321 = vst [vmem:[%s2078_s8 + $0x1d8] sm:$0xff] %v1320_v36  ;;  %v1324_v50 = vld [vmem:[%s2082_s9 + $0x1e8] sm:$0xff]  ;;  %v1326_v20 = vld [vmem:[%s2082_s9 + $0x1f0] sm:$0xff] }
 0x1e1   : >> { %1323 = vst [vmem:[%s2078_s8 + $0x1e0] sm:$0xff] %v1322_v17  ;;  %1325 = vst [vmem:[%s2078_s8 + $0x1e8] sm:$0xff] %v1324_v50  ;;  %v1328_v11 = vld [vmem:[%s2082_s9 + $0x1f8] sm:$0xff]  ;;  %s4615_s9 = smov %s3900_s16 }
 0x1e2   : >> { %1327 = vst [vmem:[%s2078_s8 + $0x1f0] sm:$0xff] %v1326_v20  ;;  %1329 = vst [vmem:[%s2078_s8 + $0x1f8] sm:$0xff] %v1328_v11  ;;  %s4614_s8 = smov %s3903_s17 }
 0x1e3 PF: > { %s4009_s18 = sand.u32 63, %s1189_s5   ;;  %s1762_s19 = sshll.u32 %s3833_s6, 13 }
 0x1e4   : > { %s1341_s20 = sshra.s32 %s1762_s19, 4  ;;  %p1744_p2 = scmp.le.s32.totalorder %s4009_s18, 0 }
 0x1e5   : > { %s1342_s21 = scalar_lea.vmem %s3066_s25, %s1341_s20 [#allocation2]   ;;  %s1345_s22 = scalar_lea.vmem %s3820_s30, %s1341_s20  }
 0x1e6   : > { %1639 = sbr.rel (%p1744_p2) target bundleno = 499 (0x1f3), region = 143  ;;  %s2092_s23 = smov (!%p1744_p2), %s1345_s22  }
 0x1e7   : > { %s2096_s24 = smov (!%p1744_p2), %s1342_s21   ;;  %s2100_s26 = smov (!%p1744_p2), 0  }
 0x1e8   : > { %s2104_s27 = smov (!%p1744_p2), 0  }
 0x1eb LB: >> { %v1357_v22 = vld [vmem:[%s2098_s24] sm:$0xff]  ;;  %s1359_s28 = sadd.s32 1, %s2102_s26  ;;  %s1351_s27 = sadd.s32 1, %s2106_s27   ;;  %s2106_s27 = sphi %s2104_s27, %s1351_s27   ;;  %s2102_s26 = sphi %s2100_s26, %s2101_s26   ;;  %s2098_s24 = sphi %s2096_s24, %s1364_s24   ;;  %s2094_s23 = sphi %s2092_s23, %s1365_s23  }
 0x1ec   : >> { %1358 = vst [vmem:[%s2094_s23] sm:$0xff] %v1357_v22  ;;  %p1360_p3 = scmp.ge.s32.totalorder %s1359_s28, %s4009_s18  ;;  %p1350_p4 = scmp.ge.s32.totalorder %s1351_s27, %s4009_s18 }
 0x1ee   : >> { %s4630_s28 = smov (%p1360_p3, %s1359_s28), 0  ;;  %1353 = sbr.rel (!%p1350_p4) target bundleno = 491 (0x1eb), region = 149 }
 0x1ef   : >> { %s1745_s29 = sshll.u32 %s4630_s28, 3  ;;  %s2101_s26 = smov %s4630_s28  }
 0x1f0   : >> { %s1364_s24 = scalar_lea.vmem %s1342_s21, %s1745_s29 [#allocation2]   ;;  %s1365_s23 = scalar_lea.vmem %s1345_s22, %s1745_s29  }
 0x1f3 PF: > { %1368 = sbr.rel (%p1185_p11) target bundleno = 563 (0x233), region = 69  ;;  %s4021_s2 = ssub.s32 (!%p1185_p11), %s3822_s3, %s3826_s4 }
 0x1f4   : > { %s1374_s5 = sshrl.u32 (!%p1185_p11), %s3822_s3, 3  ;;  %s1371_s6 = scalar_lea.vmem (!%p1185_p11), %s3066_s25, %s4021_s2 [#allocation2] }
 0x1f5   : > { %s1373_s8 = scalar_lea.vmem (!%p1185_p11), %s3820_s30, %s4021_s2  ;;  %s4030_s9 = sshrl.u32 (!%p1185_p11), %s1374_s5, 6 }
 0x1f6   : > { %p1747_p5 = scmp.le.s32.totalorder (!%p1185_p11), %s4030_s9, 0 }
 0x1f8   : > { %1653 = sbr.rel (%p1747_p5) target bundleno = 542 (0x21e), region = 154  ;;  %s4617_s11 = smov (!%p1747_p5), %s3820_s30 }
 0x1f9   : > { %s4618_s12 = smov (!%p1747_p5), %s3066_s25  ;;  %s4039_s14 = smov (!%p1747_p5), 0  }
 0x1fa   : > { %s4041_s15 = smov (!%p1747_p5), 0  }
 0x1fd LB: >> { %v1387_v56 = vld [vmem:[%s2114_s12] sm:$0xff]  ;;  %v1389_v18 = vld [vmem:[%s2114_s12 + $0x8] sm:$0xff]  ;;  %v1391_v6 = vld [vmem:[%s2114_s12 + $0x10] sm:$0xff]  ;;  %s1515_s16 = sadd.s32 1, %s2118_s14  ;;  %s1381_s15 = sadd.s32 1, %s2122_s15   ;;  %s2122_s15 = sphi %s4041_s15, %s1381_s15   ;;  %s2118_s14 = sphi %s4039_s14, %s4621_s14   ;;  %s2114_s12 = sphi %s4618_s12, %s4620_s12   ;;  %s2110_s11 = sphi %s4617_s11, %s4619_s11  }
 0x1fe   : >> { %1388 = vst [vmem:[%s2110_s11] sm:$0xff] %v1387_v56  ;;  %1390 = vst [vmem:[%s2110_s11 + $0x8] sm:$0xff] %v1389_v18  ;;  %v1393_v13 = vld [vmem:[%s2114_s12 + $0x18] sm:$0xff]  ;;  %v1395_v26 = vld [vmem:[%s2114_s12 + $0x20] sm:$0xff]  ;;  %p1516_p6 = scmp.ge.s32.totalorder %s1515_s16, %s4030_s9  ;;  %p1380_p7 = scmp.ge.s32.totalorder %s1381_s15, %s4030_s9 }
 0x1ff   : >> { %1392 = vst [vmem:[%s2110_s11 + $0x10] sm:$0xff] %v1391_v6  ;;  %v1397_v16 = vld [vmem:[%s2114_s12 + $0x28] sm:$0xff]  ;;  %1394 = vst [vmem:[%s2110_s11 + $0x18] sm:$0xff] %v1393_v13  ;;  %v1399_v24 = vld [vmem:[%s2114_s12 + $0x30] sm:$0xff] }
 0x200   : >> { %1396 = vst [vmem:[%s2110_s11 + $0x20] sm:$0xff] %v1395_v26  ;;  %1398 = vst [vmem:[%s2110_s11 + $0x28] sm:$0xff] %v1397_v16  ;;  %v1401_v28 = vld [vmem:[%s2114_s12 + $0x38] sm:$0xff]  ;;  %v1403_v59 = vld [vmem:[%s2114_s12 + $0x40] sm:$0xff]  ;;  %s4632_s16 = smov (%p1516_p6, %s1515_s16), 0 }
 0x201   : >> { %1400 = vst [vmem:[%s2110_s11 + $0x30] sm:$0xff] %v1399_v24  ;;  %1402 = vst [vmem:[%s2110_s11 + $0x38] sm:$0xff] %v1401_v28  ;;  %v1405_v46 = vld [vmem:[%s2114_s12 + $0x48] sm:$0xff]  ;;  %v1407_v21 = vld [vmem:[%s2114_s12 + $0x50] sm:$0xff]  ;;  %s1748_s17 = sshll.u32 %s4632_s16, 9  ;;  %s4621_s14 = smov %s4632_s16 }
 0x202   : >> { %1404 = vst [vmem:[%s2110_s11 + $0x40] sm:$0xff] %v1403_v59  ;;  %v1409_v14 = vld [vmem:[%s2114_s12 + $0x58] sm:$0xff]  ;;  %1406 = vst [vmem:[%s2110_s11 + $0x48] sm:$0xff] %v1405_v46  ;;  %v1411_v34 = vld [vmem:[%s2114_s12 + $0x60] sm:$0xff]  ;;  %s4097_s18 = scalar_lea.vmem %s3066_s25, %s1748_s17 [#allocation2]   ;;  %s4100_s19 = scalar_lea.vmem %s3820_s30, %s1748_s17  }
 0x203   : >> { %1408 = vst [vmem:[%s2110_s11 + $0x50] sm:$0xff] %v1407_v21  ;;  %1410 = vst [vmem:[%s2110_s11 + $0x58] sm:$0xff] %v1409_v14  ;;  %v1413_v4 = vld [vmem:[%s2114_s12 + $0x68] sm:$0xff]  ;;  %v1415_v19 = vld [vmem:[%s2114_s12 + $0x70] sm:$0xff] }
 0x204   : >> { %1412 = vst [vmem:[%s2110_s11 + $0x60] sm:$0xff] %v1411_v34  ;;  %1414 = vst [vmem:[%s2110_s11 + $0x68] sm:$0xff] %v1413_v4  ;;  %v1417_v3 = vld [vmem:[%s2114_s12 + $0x78] sm:$0xff]  ;;  %v1419_v54 = vld [vmem:[%s2114_s12 + $0x80] sm:$0xff] }
 0x205   : >> { %1416 = vst [vmem:[%s2110_s11 + $0x70] sm:$0xff] %v1415_v19  ;;  %v1421_v43 = vld [vmem:[%s2114_s12 + $0x88] sm:$0xff]  ;;  %1418 = vst [vmem:[%s2110_s11 + $0x78] sm:$0xff] %v1417_v3  ;;  %v1423_v35 = vld [vmem:[%s2114_s12 + $0x90] sm:$0xff] }
 0x206   : >> { %1420 = vst [vmem:[%s2110_s11 + $0x80] sm:$0xff] %v1419_v54  ;;  %1422 = vst [vmem:[%s2110_s11 + $0x88] sm:$0xff] %v1421_v43  ;;  %v1425_v63 = vld [vmem:[%s2114_s12 + $0x98] sm:$0xff]  ;;  %v1427_v62 = vld [vmem:[%s2114_s12 + $0xa0] sm:$0xff] }
 0x207   : >> { %1424 = vst [vmem:[%s2110_s11 + $0x90] sm:$0xff] %v1423_v35  ;;  %1426 = vst [vmem:[%s2110_s11 + $0x98] sm:$0xff] %v1425_v63  ;;  %v1429_v2 = vld [vmem:[%s2114_s12 + $0xa8] sm:$0xff]  ;;  %v1431_v49 = vld [vmem:[%s2114_s12 + $0xb0] sm:$0xff] }
 0x208   : >> { %1428 = vst [vmem:[%s2110_s11 + $0xa0] sm:$0xff] %v1427_v62  ;;  %v1433_v23 = vld [vmem:[%s2114_s12 + $0xb8] sm:$0xff]  ;;  %1430 = vst [vmem:[%s2110_s11 + $0xa8] sm:$0xff] %v1429_v2  ;;  %v1435_v0 = vld [vmem:[%s2114_s12 + $0xc0] sm:$0xff] }
 0x209   : >> { %1432 = vst [vmem:[%s2110_s11 + $0xb0] sm:$0xff] %v1431_v49  ;;  %1434 = vst [vmem:[%s2110_s11 + $0xb8] sm:$0xff] %v1433_v23  ;;  %v1437_v5 = vld [vmem:[%s2114_s12 + $0xc8] sm:$0xff]  ;;  %v1439_v15 = vld [vmem:[%s2114_s12 + $0xd0] sm:$0xff] }
 0x20a   : >> { %1436 = vst [vmem:[%s2110_s11 + $0xc0] sm:$0xff] %v1435_v0  ;;  %1438 = vst [vmem:[%s2110_s11 + $0xc8] sm:$0xff] %v1437_v5  ;;  %v1441_v38 = vld [vmem:[%s2114_s12 + $0xd8] sm:$0xff]  ;;  %v1443_v53 = vld [vmem:[%s2114_s12 + $0xe0] sm:$0xff] }
 0x20b   : >> { %1440 = vst [vmem:[%s2110_s11 + $0xd0] sm:$0xff] %v1439_v15  ;;  %v1445_v44 = vld [vmem:[%s2114_s12 + $0xe8] sm:$0xff]  ;;  %1442 = vst [vmem:[%s2110_s11 + $0xd8] sm:$0xff] %v1441_v38  ;;  %v1447_v1 = vld [vmem:[%s2114_s12 + $0xf0] sm:$0xff] }
 0x20c   : >> { %1444 = vst [vmem:[%s2110_s11 + $0xe0] sm:$0xff] %v1443_v53  ;;  %1446 = vst [vmem:[%s2110_s11 + $0xe8] sm:$0xff] %v1445_v44  ;;  %v1449_v39 = vld [vmem:[%s2114_s12 + $0xf8] sm:$0xff]  ;;  %v1451_v55 = vld [vmem:[%s2114_s12 + $0x100] sm:$0xff] }
 0x20d   : >> { %1448 = vst [vmem:[%s2110_s11 + $0xf0] sm:$0xff] %v1447_v1  ;;  %1450 = vst [vmem:[%s2110_s11 + $0xf8] sm:$0xff] %v1449_v39  ;;  %v1453_v10 = vld [vmem:[%s2114_s12 + $0x108] sm:$0xff]  ;;  %v1455_v45 = vld [vmem:[%s2114_s12 + $0x110] sm:$0xff] }
 0x20e   : >> { %1452 = vst [vmem:[%s2110_s11 + $0x100] sm:$0xff] %v1451_v55  ;;  %v1457_v41 = vld [vmem:[%s2114_s12 + $0x118] sm:$0xff]  ;;  %1454 = vst [vmem:[%s2110_s11 + $0x108] sm:$0xff] %v1453_v10  ;;  %v1459_v32 = vld [vmem:[%s2114_s12 + $0x120] sm:$0xff] }
 0x20f   : >> { %1456 = vst [vmem:[%s2110_s11 + $0x110] sm:$0xff] %v1455_v45  ;;  %1458 = vst [vmem:[%s2110_s11 + $0x118] sm:$0xff] %v1457_v41  ;;  %v1461_v40 = vld [vmem:[%s2114_s12 + $0x128] sm:$0xff]  ;;  %v1463_v12 = vld [vmem:[%s2114_s12 + $0x130] sm:$0xff] }
 0x210   : >> { %1460 = vst [vmem:[%s2110_s11 + $0x120] sm:$0xff] %v1459_v32  ;;  %1462 = vst [vmem:[%s2110_s11 + $0x128] sm:$0xff] %v1461_v40  ;;  %v1465_v27 = vld [vmem:[%s2114_s12 + $0x138] sm:$0xff]  ;;  %v1467_v42 = vld [vmem:[%s2114_s12 + $0x140] sm:$0xff] }
 0x211   : >> { %1464 = vst [vmem:[%s2110_s11 + $0x130] sm:$0xff] %v1463_v12  ;;  %v1469_v9 = vld [vmem:[%s2114_s12 + $0x148] sm:$0xff]  ;;  %1466 = vst [vmem:[%s2110_s11 + $0x138] sm:$0xff] %v1465_v27  ;;  %v1471_v57 = vld [vmem:[%s2114_s12 + $0x150] sm:$0xff] }
 0x212   : >> { %1468 = vst [vmem:[%s2110_s11 + $0x140] sm:$0xff] %v1467_v42  ;;  %1470 = vst [vmem:[%s2110_s11 + $0x148] sm:$0xff] %v1469_v9  ;;  %v1473_v61 = vld [vmem:[%s2114_s12 + $0x158] sm:$0xff]  ;;  %v1475_v29 = vld [vmem:[%s2114_s12 + $0x160] sm:$0xff] }
 0x213   : >> { %1472 = vst [vmem:[%s2110_s11 + $0x150] sm:$0xff] %v1471_v57  ;;  %1474 = vst [vmem:[%s2110_s11 + $0x158] sm:$0xff] %v1473_v61  ;;  %v1477_v52 = vld [vmem:[%s2114_s12 + $0x168] sm:$0xff]  ;;  %v1479_v25 = vld [vmem:[%s2114_s12 + $0x170] sm:$0xff] }
 0x214   : >> { %1476 = vst [vmem:[%s2110_s11 + $0x160] sm:$0xff] %v1475_v29  ;;  %v1481_v51 = vld [vmem:[%s2114_s12 + $0x178] sm:$0xff]  ;;  %1478 = vst [vmem:[%s2110_s11 + $0x168] sm:$0xff] %v1477_v52  ;;  %v1483_v30 = vld [vmem:[%s2114_s12 + $0x180] sm:$0xff] }
 0x215   : >> { %1480 = vst [vmem:[%s2110_s11 + $0x170] sm:$0xff] %v1479_v25  ;;  %1482 = vst [vmem:[%s2110_s11 + $0x178] sm:$0xff] %v1481_v51  ;;  %v1485_v31 = vld [vmem:[%s2114_s12 + $0x188] sm:$0xff]  ;;  %v1487_v48 = vld [vmem:[%s2114_s12 + $0x190] sm:$0xff] }
 0x216   : >> { %1484 = vst [vmem:[%s2110_s11 + $0x180] sm:$0xff] %v1483_v30  ;;  %1486 = vst [vmem:[%s2110_s11 + $0x188] sm:$0xff] %v1485_v31  ;;  %v1489_v47 = vld [vmem:[%s2114_s12 + $0x198] sm:$0xff]  ;;  %v1491_v7 = vld [vmem:[%s2114_s12 + $0x1a0] sm:$0xff] }
 0x217   : >> { %1488 = vst [vmem:[%s2110_s11 + $0x190] sm:$0xff] %v1487_v48  ;;  %v1493_v8 = vld [vmem:[%s2114_s12 + $0x1a8] sm:$0xff]  ;;  %1490 = vst [vmem:[%s2110_s11 + $0x198] sm:$0xff] %v1489_v47  ;;  %v1495_v60 = vld [vmem:[%s2114_s12 + $0x1b0] sm:$0xff] }
 0x218   : >> { %1492 = vst [vmem:[%s2110_s11 + $0x1a0] sm:$0xff] %v1491_v7  ;;  %1494 = vst [vmem:[%s2110_s11 + $0x1a8] sm:$0xff] %v1493_v8  ;;  %v1497_v33 = vld [vmem:[%s2114_s12 + $0x1b8] sm:$0xff]  ;;  %v1499_v58 = vld [vmem:[%s2114_s12 + $0x1c0] sm:$0xff] }
 0x219   : >> { %1496 = vst [vmem:[%s2110_s11 + $0x1b0] sm:$0xff] %v1495_v60  ;;  %1498 = vst [vmem:[%s2110_s11 + $0x1b8] sm:$0xff] %v1497_v33  ;;  %v1501_v37 = vld [vmem:[%s2114_s12 + $0x1c8] sm:$0xff]  ;;  %v1503_v36 = vld [vmem:[%s2114_s12 + $0x1d0] sm:$0xff]  ;;  %1383 = sbr.rel (!%p1380_p7) target bundleno = 509 (0x1fd), region = 160 }
 0x21a   : >> { %1500 = vst [vmem:[%s2110_s11 + $0x1c0] sm:$0xff] %v1499_v58  ;;  %v1505_v17 = vld [vmem:[%s2114_s12 + $0x1d8] sm:$0xff]  ;;  %1502 = vst [vmem:[%s2110_s11 + $0x1c8] sm:$0xff] %v1501_v37  ;;  %v1507_v50 = vld [vmem:[%s2114_s12 + $0x1e0] sm:$0xff] }
 0x21b   : >> { %1504 = vst [vmem:[%s2110_s11 + $0x1d0] sm:$0xff] %v1503_v36  ;;  %1506 = vst [vmem:[%s2110_s11 + $0x1d8] sm:$0xff] %v1505_v17  ;;  %v1509_v20 = vld [vmem:[%s2114_s12 + $0x1e8] sm:$0xff]  ;;  %v1511_v11 = vld [vmem:[%s2114_s12 + $0x1f0] sm:$0xff] }
 0x21c   : >> { %1508 = vst [vmem:[%s2110_s11 + $0x1e0] sm:$0xff] %v1507_v50  ;;  %1510 = vst [vmem:[%s2110_s11 + $0x1e8] sm:$0xff] %v1509_v20  ;;  %v1513_v22 = vld [vmem:[%s2114_s12 + $0x1f8] sm:$0xff]  ;;  %s4620_s12 = smov %s4097_s18 }
 0x21d   : >> { %1512 = vst [vmem:[%s2110_s11 + $0x1f0] sm:$0xff] %v1511_v11  ;;  %1514 = vst [vmem:[%s2110_s11 + $0x1f8] sm:$0xff] %v1513_v22  ;;  %s4619_s11 = smov %s4100_s19 }
 0x21e PF: > { %s4206_s20 = sand.u32 63, %s1374_s5   ;;  %s1764_s21 = sshll.u32 %s4030_s9, 13 }
 0x21f   : > { %s1526_s22 = sshra.s32 %s1764_s21, 4  ;;  %p1753_p8 = scmp.le.s32.totalorder %s4206_s20, 0 }
 0x220   : > { %s1527_s23 = scalar_lea.vmem %s3066_s25, %s1526_s22 [#allocation2]   ;;  %s1530_s24 = scalar_lea.vmem %s3820_s30, %s1526_s22  }
 0x221   : > { %1667 = sbr.rel (%p1753_p8) target bundleno = 558 (0x22e), region = 165  ;;  %s2124_s26 = smov (!%p1753_p8), %s1530_s24  }
 0x222   : > { %s2128_s27 = smov (!%p1753_p8), %s1527_s23   ;;  %s2132_s28 = smov (!%p1753_p8), 0  }
 0x223   : > { %s2136_s29 = smov (!%p1753_p8), 0  }
 0x226 LB: >> { %v1542_v56 = vld [vmem:[%s2130_s27] sm:$0xff]  ;;  %s1544_s5 = sadd.s32 1, %s2134_s28  ;;  %s1536_s29 = sadd.s32 1, %s2138_s29   ;;  %s2138_s29 = sphi %s2136_s29, %s1536_s29   ;;  %s2134_s28 = sphi %s2132_s28, %s2133_s28   ;;  %s2130_s27 = sphi %s2128_s27, %s1549_s27   ;;  %s2126_s26 = sphi %s2124_s26, %s1550_s26  }
 0x227   : >> { %1543 = vst [vmem:[%s2126_s26] sm:$0xff] %v1542_v56  ;;  %p1545_p9 = scmp.ge.s32.totalorder %s1544_s5, %s4206_s20  ;;  %p1535_p10 = scmp.ge.s32.totalorder %s1536_s29, %s4206_s20 }
 0x229   : >> { %s4634_s5 = smov (%p1545_p9, %s1544_s5), 0  ;;  %1538 = sbr.rel (!%p1535_p10) target bundleno = 550 (0x226), region = 171 }
 0x22a   : >> { %s1754_s9 = sshll.u32 %s4634_s5, 3  ;;  %s2133_s28 = smov %s4634_s5  }
 0x22b   : >> { %s1549_s27 = scalar_lea.vmem %s1527_s23, %s1754_s9 [#allocation2]   ;;  %s1550_s26 = scalar_lea.vmem %s1530_s24, %s1754_s9  }
 0x22e PF: > { %s2142_s11 = smov 1  }
 0x22f   : > { %s1551_s12 = sshll.u32 %s2142_s11, %s3826_s4 }
 0x230   : > { %s1756_s14 = sadd.s32 4294967295, %s1551_s12 }
 0x231   : > { %v1561_v18 = vld [vmem:[%s1371_s6] sm:%s1756_s14] }
 0x232   : > { %1562 = vst [vmem:[%s1373_s8] sm:%s1756_s14] %v1561_v18 }
 0x233 PF: > { %p1757_p11 = scmp.ge.u32.totalorder %s3822_s3, 8 }
 0x234   : > { %s2143_s15 = smov (!%p1757_p11), 1  }
 0x235   : > { %1171 = sbr.rel (%p1757_p11) target bundleno = 572 (0x23c), region = 40  ;;  %s1172_s16 = sshll.u32 (!%p1757_p11), %s2143_s15, %s3822_s3 }
 0x236   : > { %s1758_s17 = sadd.s32 (!%p1757_p11), 4294967295, %s1172_s16 }
 0x23a   : > { %v1182_v6 = vld [vmem:[%s3066_s25] sm:%s1758_s17] }
 0x23b   : > { %1183 = vst [vmem:[%s3820_s30] sm:%s1758_s17] %v1182_v6 }
 0x23c PF: > { %p8_p12 = scmp.ge.s32.totalorder %s2169_s10, 4   ;;  %s4622_s6 = smov %s2070_s7 }
 0x23d   : > { %s4623_s7 = smov %s2177_s13  ;;  %s4624_s8 = smov %s2169_s10 }
 0x23e   :  { %10 = sbr.rel (!%p8_p12) target bundleno = 2 (0x2), region = 182 }

</bundles_post_ra>
